<compile_context>
chip_gen: v6e
topology: v6e:2x2x1
jax: 0.10.0
libtpu: 0.0.40
codegen_flags: <defaults>
</compile_context>

<pallas_src>
import functools

import jax
import jax.numpy as jnp
from jax.experimental import pallas as pl
from jax.experimental.pallas import tpu as pltpu

_LANE = 128


def _round_up(x, m):
    return ((x + m - 1) // m) * m


def _vmem_budget_bytes():
    """Per-core VMEM budget based on the attached TPU generation (conservative)."""
    try:
        kind = jax.devices()[0].device_kind.lower()
    except Exception:  # defensive: unknown backend
        kind = ""
    if any(tag in kind for tag in ("v4", "v5", "v6")):
        return 100 * 1024 * 1024      # 128 MiB physical VMEM
    return 44 * 1024 * 1024           # v7x (64 MiB physical) / unknown: stay safe


# ----------------------------------------------------------------------------
# Fused path: A resident in VMEM, both layers in one pallas_call.
# ----------------------------------------------------------------------------
def _fused_gcn_kernel(a_ref, s1_ref, w2_ref, out_ref):
    a = a_ref[...]                                                  # bf16, resident
    h = jnp.maximum(
        jnp.dot(a, s1_ref[...], preferred_element_type=jnp.float32), 0.0)
    s2 = jnp.dot(h.astype(jnp.bfloat16), w2_ref[...],
                 preferred_element_type=jnp.float32)
    out = jnp.dot(a, s2.astype(jnp.bfloat16),
                  preferred_element_type=jnp.float32)
    out_ref[...] = out.astype(out_ref.dtype)


def _fused_forward(a_bf16, s1_bf16, w2_bf16, vmem_limit):
    n_pad = a_bf16.shape[0]
    d = s1_bf16.shape[1]
    c = w2_bf16.shape[1]
    return pl.pallas_call(
        _fused_gcn_kernel,
        out_shape=jax.ShapeDtypeStruct((n_pad, c), jnp.float32),
        grid_spec=pltpu.PrefetchScalarGridSpec(
            num_scalar_prefetch=0,
            grid=(1,),
            in_specs=[
                pl.BlockSpec((n_pad, n_pad), lambda i: (0, 0)),
                pl.BlockSpec((n_pad, d), lambda i: (0, 0)),
                pl.BlockSpec((d, c), lambda i: (0, 0)),
            ],
            out_specs=pl.BlockSpec((n_pad, c), lambda i: (0, 0)),
        ),
        compiler_params=pltpu.CompilerParams(
            dimension_semantics=("arbitrary",),
            vmem_limit_bytes=vmem_limit,
        ),
    )(a_bf16, s1_bf16, w2_bf16)


def _fused_fits(n_pad, d, budget):
    """Does the fused single-block kernel fit the VMEM budget?"""
    a_bytes = 2 * (n_pad * n_pad * 2)                     # bf16 A, worst-case 2 bufs
    io_bytes = 2 * (n_pad * d * 2) + 2 * (d * d * 2)      # s1, w2
    io_bytes += 2 * (n_pad * d * 4)                       # f32 logits tile
    inter = 3 * (n_pad * d * 4)                           # h / s2 spill headroom
    return a_bytes + io_bytes + inter + (4 << 20) <= budget


# ----------------------------------------------------------------------------
# Streamed path: row-tiled A @ support, auto double-buffered by BlockSpec.
# ----------------------------------------------------------------------------
def _a_matmul_kernel(a_ref, s_ref, out_ref, *, apply_relu):
    y = jnp.dot(a_ref[...], s_ref[...], preferred_element_type=jnp.float32)
    if apply_relu:
        y = jnp.maximum(y, 0.0)
    out_ref[...] = y.astype(out_ref.dtype)


def _streamed_a_matmul(a_bf16, support_bf16, *, apply_relu, out_dtype, tm, vmem_limit):
    n_rows, n_cols = a_bf16.shape
    d = support_bf16.shape[1]
    kernel = functools.partial(_a_matmul_kernel, apply_relu=apply_relu)
    return pl.pallas_call(
        kernel,
        out_shape=jax.ShapeDtypeStruct((n_rows, d), out_dtype),
        grid_spec=pltpu.PrefetchScalarGridSpec(
            num_scalar_prefetch=0,
            grid=(n_rows // tm,),
            in_specs=[
                # A row tile: new block each step -> double-buffered DMA stream.
                pl.BlockSpec((tm, n_cols), lambda i: (i, 0)),
                # Small support matrix: same block every step -> stays resident.
                pl.BlockSpec((n_cols, d), lambda i: (0, 0)),
            ],
            out_specs=pl.BlockSpec((tm, d), lambda i: (i, 0)),
        ),
        compiler_params=pltpu.CompilerParams(
            dimension_semantics=("parallel",),
            vmem_limit_bytes=vmem_limit,
        ),
    )(a_bf16, support_bf16)


def _pick_row_tile(n_col_pad, d_out, budget):
    """Largest 128-multiple row tile whose full footprint fits the VMEM budget."""
    resident = 2 * (n_col_pad * d_out * 2)            # resident bf16 support (2 bufs)
    slack = 2 * 1024 * 1024
    avail = budget - resident - slack
    per_row = 2 * (n_col_pad * 2 + d_out * 4)         # 2 bufs: A row (bf16) + out row (f32)
    tm = avail // per_row if avail > 0 else 0
    tm = (tm // _LANE) * _LANE
    return int(min(1024, max(_LANE, tm)))


# ----------------------------------------------------------------------------
# Full GCN forward.
# ----------------------------------------------------------------------------
@functools.partial(jax.jit, static_argnames=("row_tile", "force_streamed"))
def gcn_forward(adjacency, feature, w1, w2, *, row_tile=None, force_streamed=False):
    """h = relu(A @ (X @ W1)); logits = A @ (h @ W2)."""
    n = feature.shape[0]
    hidden = w1.shape[1]
    num_classes = w2.shape[1]

    hid_pad = _round_up(hidden, _LANE)
    cls_pad = _round_up(num_classes, _LANE)
    n_col_pad = _round_up(n, _LANE)
    d_pad = max(hid_pad, cls_pad)
    budget = _vmem_budget_bytes()

    # Tiny dense matmul X @ W1 computed once in XLA (f32), then lane-padded to a
    # 128-wide support so the Pallas layer-1 output store is lane-dense.
    s1 = jnp.dot(feature.astype(jnp.float32), w1.astype(jnp.float32),
                 preferred_element_type=jnp.float32)
    s1_bf16 = jnp.pad(s1.astype(jnp.bfloat16),
                      ((0, n_col_pad - n), (0, hid_pad - hidden)))
    w2_bf16 = jnp.pad(w2.astype(jnp.bfloat16),
                      ((0, hid_pad - hidden), (0, cls_pad - num_classes)))

    use_fused = (not force_streamed) and _fused_fits(n_col_pad, d_pad, budget)

    if use_fused:
        # A is read from HBM once; both layers fused in a single pallas_call.
        a_bf16 = jnp.pad(adjacency.astype(jnp.bfloat16),
                         ((0, n_col_pad - n), (0, n_col_pad - n)))
        logits_pad = _fused_forward(a_bf16, s1_bf16, w2_bf16, budget)
    else:
        tm = _pick_row_tile(n_col_pad, d_pad, budget) if row_tile is None else int(row_tile)
        n_row_pad = _round_up(n, tm)
        # bf16 cast BEFORE padding: no f32 (n_pad, n_pad) intermediate in HBM.
        # Rows padded to a tile multiple, columns only to a lane multiple.
        a_bf16 = jnp.pad(adjacency.astype(jnp.bfloat16),
                         ((0, n_row_pad - n), (0, n_col_pad - n)))

        # Layer 1: h = relu(A @ S1), streamed over A row tiles (lane-dense 128 out).
        h = _streamed_a_matmul(a_bf16, s1_bf16, apply_relu=True,
                               out_dtype=jnp.bfloat16, tm=tm, vmem_limit=budget)
        # Layer 2 support: tiny dense h @ W2 computed once in XLA.
        s2 = jnp.dot(h[:n_col_pad], w2_bf16,
                     preferred_element_type=jnp.float32).astype(jnp.bfloat16)
        # Layer 2: logits = A @ S2, streamed over the same bf16 A.
        logits_pad = _streamed_a_matmul(a_bf16, s2, apply_relu=False,
                                        out_dtype=jnp.float32, tm=tm,
                                        vmem_limit=budget)

    return logits_pad[:n, :num_classes]


if __name__ == "__main__":
    # Small synthetic problem: N nodes, input_dim features, hidden 16, classes 7.
    N = 300
    input_dim = 48
    hidden_dim = 16
    num_classes = 7

    key = jax.random.PRNGKey(0)
    k_adj, k_x, k_w1, k_w2 = jax.random.split(key, 4)

    # Dense (row-normalized) adjacency standing in for the sparse matrix.
    adj_raw = (jax.random.uniform(k_adj, (N, N)) > 0.7).astype(jnp.float32)
    adj_raw = adj_raw + jnp.eye(N, dtype=jnp.float32)            # self loops
    adjacency = adj_raw / jnp.sum(adj_raw, axis=1, keepdims=True)

    feature = jax.random.normal(k_x, (N, input_dim), dtype=jnp.float32)
    w1 = jax.random.normal(k_w1, (input_dim, hidden_dim), dtype=jnp.float32) * 0.1
    w2 = jax.random.normal(k_w2, (hidden_dim, num_classes), dtype=jnp.float32) * 0.1

    # Fused A-resident path (default for small graphs: A read from HBM once).
    logits_fused = jax.block_until_ready(gcn_forward(adjacency, feature, w1, w2))
    # Streamed row-tiled path (used automatically for large graphs; forced here
    # to exercise padding + the pipelined A stream: n_row_pad=384, grid=(3,)).
    logits_streamed = jax.block_until_ready(
        gcn_forward(adjacency, feature, w1, w2, row_tile=128, force_streamed=True))

    assert logits_fused.shape == (N, num_classes)
    assert logits_streamed.shape == (N, num_classes)

    # Reference 1: mirror the kernel's bf16 quantization (f32 accumulation) -> tight check.
    a_q = adjacency.astype(jnp.bfloat16).astype(jnp.float32)
    s1_q = (feature @ w1).astype(jnp.bfloat16).astype(jnp.float32)
    h_q = jnp.maximum(a_q @ s1_q, 0.0).astype(jnp.bfloat16).astype(jnp.float32)
    w2_q = w2.astype(jnp.bfloat16).astype(jnp.float32)
    s2_q = (h_q @ w2_q).astype(jnp.bfloat16).astype(jnp.float32)
    ref_q = a_q @ s2_q
    assert jnp.allclose(logits_fused, ref_q, atol=2e-3, rtol=2e-3)
    assert jnp.allclose(logits_streamed, ref_q, atol=2e-3, rtol=2e-3)
    assert jnp.allclose(logits_fused, logits_streamed, atol=2e-3, rtol=2e-3)

    # Reference 2: pure f32 math -> loose structural check (bf16 A/W2 quantization).
    h_f32 = jnp.maximum(adjacency @ (feature @ w1), 0.0)
    ref_f32 = adjacency @ (h_f32 @ w2)
    assert jnp.allclose(logits_fused, ref_f32, atol=5e-2, rtol=5e-2)
    assert jnp.allclose(logits_streamed, ref_f32, atol=5e-2, rtol=5e-2)

    print("KERNEL_OK")
</pallas_src>

<mosaic_0001>
module attributes {stable_mosaic.version = 11 : i64} {
  func.func @_fused_gcn_kernel(%arg0: i32, %arg1: memref<384x384xbf16, #tpu.memory_space<vmem>>, %arg2: memref<384x128xbf16, #tpu.memory_space<vmem>>, %arg3: memref<128x128xbf16, #tpu.memory_space<vmem>>, %arg4: memref<384x128xf32, #tpu.memory_space<vmem>>) attributes {dimension_semantics = [#tpu.dimension_semantics<arbitrary>], iteration_bounds = array<i64: 1>, scalar_prefetch = 0 : i64, scratch_operands = 0 : i64, tpu.core_type = #tpu.core_type<tc>, window_params = [{pipeline_mode = #tpu.pipeline_mode<synchronous>, transform_indices = @transform_0, window_bounds = array<i64: 384, 384>}, {pipeline_mode = #tpu.pipeline_mode<synchronous>, transform_indices = @transform_1, window_bounds = array<i64: 384, 128>}, {pipeline_mode = #tpu.pipeline_mode<synchronous>, transform_indices = @transform_2, window_bounds = array<i64: 128, 128>}, {pipeline_mode = #tpu.pipeline_mode<synchronous>, transform_indices = @transform_3, window_bounds = array<i64: 384, 128>}]} {
    %c0 = arith.constant 0 : index
    %c0_0 = arith.constant 0 : index
    %0 = vector.load %arg1[%c0, %c0_0] : memref<384x384xbf16, #tpu.memory_space<vmem>>, vector<384x384xbf16>
    %c0_1 = arith.constant 0 : index
    %c0_2 = arith.constant 0 : index
    %1 = vector.load %arg2[%c0_1, %c0_2] : memref<384x128xbf16, #tpu.memory_space<vmem>>, vector<384x128xbf16>
    %cst = arith.constant dense<0.000000e+00> : vector<384x128xf32>
    %2 = tpu.matmul %0, %1, %cst {dimension_numbers = #tpu.dot_dimension_numbers<[1], [0], [0], [1], [0, 0, 1, 1], [], []>} : vector<384x384xbf16>, vector<384x128xbf16>, vector<384x128xf32> -> vector<384x128xf32>
    %cst_3 = arith.constant 0.000000e+00 : f32
    %3 = vector.broadcast %cst_3 : f32 to vector<384x128xf32>
    %4 = arith.maximumf %2, %3 : vector<384x128xf32>
    %5 = arith.truncf %4 : vector<384x128xf32> to vector<384x128xbf16>
    %c0_4 = arith.constant 0 : index
    %c0_5 = arith.constant 0 : index
    %6 = vector.load %arg3[%c0_4, %c0_5] : memref<128x128xbf16, #tpu.memory_space<vmem>>, vector<128x128xbf16>
    %cst_6 = arith.constant dense<0.000000e+00> : vector<384x128xf32>
    %7 = tpu.matmul %5, %6, %cst_6 {dimension_numbers = #tpu.dot_dimension_numbers<[1], [0], [0], [1], [0, 0, 1, 1], [], []>} : vector<384x128xbf16>, vector<128x128xbf16>, vector<384x128xf32> -> vector<384x128xf32>
    %8 = arith.truncf %7 : vector<384x128xf32> to vector<384x128xbf16>
    %cst_7 = arith.constant dense<0.000000e+00> : vector<384x128xf32>
    %9 = tpu.matmul %0, %8, %cst_7 {dimension_numbers = #tpu.dot_dimension_numbers<[1], [0], [0], [1], [0, 0, 1, 1], [], []>} : vector<384x384xbf16>, vector<384x128xbf16>, vector<384x128xf32> -> vector<384x128xf32>
    %c0_8 = arith.constant 0 : index
    %c0_9 = arith.constant 0 : index
    %10 = vector.load %arg4[%c0_8, %c0_9] : memref<384x128xf32, #tpu.memory_space<vmem>>, vector<384x128xf32>
    tpu.vector_store %arg4[%c0_8, %c0_9], %9 {strides = array<i32>} : memref<384x128xf32, #tpu.memory_space<vmem>>, vector<384x128xf32>,
    return
  }
  func.func @transform_0(%arg0: i32) -> (i32, i32) {
    %c0_i32 = arith.constant 0 : i32
    %c0_i32_0 = arith.constant 0 : i32
    %c0_i32_1 = arith.constant 0 : i32
    return %c0_i32, %c0_i32_0 : i32, i32
  }
  func.func @transform_1(%arg0: i32) -> (i32, i32) {
    %c0_i32 = arith.constant 0 : i32
    %c0_i32_0 = arith.constant 0 : i32
    %c0_i32_1 = arith.constant 0 : i32
    return %c0_i32, %c0_i32_0 : i32, i32
  }
  func.func @transform_2(%arg0: i32) -> (i32, i32) {
    %c0_i32 = arith.constant 0 : i32
    %c0_i32_0 = arith.constant 0 : i32
    %c0_i32_1 = arith.constant 0 : i32
    return %c0_i32, %c0_i32_0 : i32, i32
  }
  func.func @transform_3(%arg0: i32) -> (i32, i32) {
    %c0_i32 = arith.constant 0 : i32
    %c0_i32_0 = arith.constant 0 : i32
    %c0_i32_1 = arith.constant 0 : i32
    return %c0_i32, %c0_i32_0 : i32, i32
  }
}

</mosaic_0001>

<bundles_post_ra>
// kernel: gcn_forward.1
= control target key start
LH: loop header
LB: loop body
LE: loop exit
PB: predicated region body
PF: predicated region fallthrough
CT: control target
= control target key end

     0   :  { %v2625_v0 = vmov 0   ;;  %s3519_s1 = inlined_call_operand.vmem [shape: bf16[384,128], index: 1, kind: input, shape index: {}]   ;;  %s3520_s0 = inlined_call_operand.vmem [shape: bf16[384,384], index: 0, kind: input, shape index: {}]   ;;  %s3521_s2 = inlined_call_operand.vmem [shape: bf16[128,128], index: 2, kind: input, shape index: {}]   ;;  %s3522_s3 = inlined_call_operand.vmem [shape: f32[384,128], index: 3, kind: output, shape index: {}]  }
   0x1   :  { %687 = vmatprep.subr.bf16.mxu0 %v2625_v0  ;;  %v2433_v1 = vld [vmem:[%s3519_s1 + $0x38] sm:$0xff]   ;;  %v2434_v2 = vld [vmem:[%s3519_s1 + $0x30] sm:$0xff]   ;;  %v2435_v3 = vld [vmem:[%s3519_s1 + $0x28] sm:$0xff]  }
   0x2   :  { %688 = vmatpush1.bf16.msra.mxu0 %v2433_v1  ;;  %v2436_v4 = vld [vmem:[%s3519_s1 + $0x20] sm:$0xff]   ;;  %v2437_v5 = vld [vmem:[%s3519_s1 + $0x18] sm:$0xff]   ;;  %v2438_v7 = vld [vmem:[%s3519_s1 + $0x10] sm:$0xff]  }
   0x3   :  { %689 = vmatprep.subr.bf16.mxu0 %v2625_v0  ;;  %v2451_v6 = vld [vmem:[%s3520_s0 + $0x4] ss:$12 sps:$4 sm:$0xff]   ;;  %v2439_v8 = vld [vmem:[%s3519_s1 + $0x8] sm:$0xff]   ;;  %v2679_v9 = vld [vmem:[%s3519_s1 + $0xb8] sm:$0xff]  }
   0x4   :  { %719 = vmatprep.mubr.bf16.mxu0 %v2451_v6  ;;  %2416 = vmatprep.subr.bf16.mxu1 %v2679_v9  ;;  %v2686_v10 = vld [vmem:[%s3519_s1 + $0xb0] sm:$0xff]   ;;  %v2440_v11 = vld [vmem:[%s3519_s1] sm:$0xff]   ;;  %v2696_v12 = vld [vmem:[%s3519_s1 + $0xa8] sm:$0xff]  }
   0x5   :  { %2424 = vmatpush3.bf16.msra.mxu1 %v2679_v9  ;;  %v2441_v13 = vld [vmem:[%s3519_s1 + $0x78] sm:$0xff]   ;;  %v2707_v14 = vld [vmem:[%s3519_s1 + $0xa0] sm:$0xff]   ;;  %v2442_v15 = vld [vmem:[%s3519_s1 + $0x70] sm:$0xff]  }
   0x6   :  { %690 = vmatpush1.bf16.msra.mxu0 %v2434_v2  ;;  %2417 = vmatprep.subr.bf16.mxu1 %v2686_v10  ;;  %v2718_v16 = vld [vmem:[%s3519_s1 + $0x98] sm:$0xff]   ;;  %v2481_v17 = vld [vmem:[%s3520_s0 + $0xc8] ss:$12 sps:$4 sm:$0xff]   ;;  %v2444_v20 = vld [vmem:[%s3519_s1 + $0x60] sm:$0xff]  }
   0x7   :  { %691 = vmatprep.subr.bf16.mxu0 %v2625_v0  ;;  %v2443_v18 = vld [vmem:[%s3519_s1 + $0x68] sm:$0xff]   ;;  %2256 = vmatprep.mubr.bf16.mxu1 %v2481_v17  ;;  %v2732_v19 = vld [vmem:[%s3519_s1 + $0x90] sm:$0xff]   ;;  %v2445_v22 = vld [vmem:[%s3519_s1 + $0x58] sm:$0xff]  }
   0x8   :  { %v2743_v21 = vld [vmem:[%s3519_s1 + $0x88] sm:$0xff]   ;;  %v2754_v23 = vld [vmem:[%s3519_s1 + $0x80] sm:$0xff]   ;;  %v2446_v24 = vld [vmem:[%s3519_s1 + $0x50] sm:$0xff]  }
   0x9   :  { %2425 = vmatpush3.bf16.msra.mxu1 %v2686_v10  ;;  %v2447_v25 = vld [vmem:[%s3519_s1 + $0x48] sm:$0xff]   ;;  %v2489_v27 = vld [vmem:[%s3520_s0 + $0xf8] ss:$12 sps:$4 sm:$0xff]   ;;  %v2490_v29 = vld [vmem:[%s3520_s0 + $0x110] ss:$12 sps:$4 sm:$0xff]  }
   0xa   :  { %692 = vmatpush1.bf16.msra.mxu0 %v2435_v3  ;;  %2418 = vmatprep.subr.bf16.mxu1 %v2696_v12  ;;  %v2482_v26 = vld [vmem:[%s3520_s0 + $0xe0] ss:$12 sps:$4 sm:$0xff]   ;;  %v2497_v31 = vld [vmem:[%s3520_s0 + $0x128] ss:$12 sps:$4 sm:$0xff]   ;;  %v2454_v34 = vld [vmem:[%s3520_s0 + $0x18] ss:$12 sps:$4 sm:$0xff]  }
   0xb   :  { %693 = vmatprep.subr.bf16.mxu0 %v2625_v0  ;;  %v2448_v28 = vld [vmem:[%s3519_s1 + $0x40] sm:$0xff]   ;;  %v2452_v32 = vld [vmem:[%s3520_s0 + $0x1c] ss:$12 sps:$4 sm:$0xff]   ;;  %v2458_v40 = vld [vmem:[%s3520_s0 + $0x4c] ss:$12 sps:$4 sm:$0xff]  }
   0xc   :  { %v2449_v30 = vld [vmem:[%s3520_s0] ss:$12 sps:$4 sm:$0xff]   ;;  %v2505_v35 = vld [vmem:[%s3520_s0 + $0x158] ss:$12 sps:$4 sm:$0xff]   ;;  %v2506_v37 = vld [vmem:[%s3520_s0 + $0x170] ss:$12 sps:$4 sm:$0xff]  }
   0xd   :  { %2426 = vmatpush3.bf16.msra.mxu1 %v2696_v12  ;;  %v2498_v33 = vld [vmem:[%s3520_s0 + $0x140] ss:$12 sps:$4 sm:$0xff]   ;;  %v2457_v38 = vld [vmem:[%s3520_s0 + $0x30] ss:$12 sps:$4 sm:$0xff]   ;;  %v2513_v39 = vld [vmem:[%s3520_s0 + $0x188] ss:$12 sps:$4 sm:$0xff]  }
   0xe   :  { %694 = vmatpush1.bf16.msra.mxu0 %v2436_v4  ;;  %2419 = vmatprep.subr.bf16.mxu1 %v2707_v14  ;;  %v2455_v36 = vld [vmem:[%s3520_s0 + $0x34] ss:$12 sps:$4 sm:$0xff]   ;;  %v2521_v43 = vld [vmem:[%s3520_s0 + $0x1b8] ss:$12 sps:$4 sm:$0xff]   ;;  %v2522_v45 = vld [vmem:[%s3520_s0 + $0x1d0] ss:$12 sps:$4 sm:$0xff]  }
   0xf   :  { %695 = vmatprep.subr.bf16.mxu0 %v2625_v0  ;;  %v2514_v41 = vld [vmem:[%s3520_s0 + $0x1a0] ss:$12 sps:$4 sm:$0xff]   ;;  %v2460_v42 = vld [vmem:[%s3520_s0 + $0x48] ss:$12 sps:$4 sm:$0xff]   ;;  %v2462_v44 = vld [vmem:[%s3520_s0 + $0x64] ss:$12 sps:$4 sm:$0xff]  }
  0x10   :  { %v2464_v46 = vld [vmem:[%s3520_s0 + $0x60] ss:$12 sps:$4 sm:$0xff]   ;;  %v2529_v47 = vld [vmem:[%s3520_s0 + $0x1e8] ss:$12 sps:$4 sm:$0xff]   ;;  %v2469_v50 = vld [vmem:[%s3520_s0 + $0x78] ss:$12 sps:$4 sm:$0xff]  }
  0x11   :  { %2427 = vmatpush3.bf16.msra.mxu1 %v2707_v14  ;;  %v2467_v48 = vld [vmem:[%s3520_s0 + $0x7c] ss:$12 sps:$4 sm:$0xff]   ;;  %v2530_v49 = vld [vmem:[%s3520_s0 + $0x200] ss:$12 sps:$4 sm:$0xff]   ;;  %v2537_v52 = vld [vmem:[%s3520_s0 + $0x218] ss:$12 sps:$4 sm:$0xff]  }
  0x12   :  { %696 = vmatpush1.bf16.msra.mxu0 %v2437_v5  ;;  %2420 = vmatprep.subr.bf16.mxu1 %v2718_v16  ;;  %v2472_v51 = vld [vmem:[%s3520_s0 + $0x94] ss:$12 sps:$4 sm:$0xff]   ;;  %v2538_v53 = vld [vmem:[%s3520_s0 + $0x230] ss:$12 sps:$4 sm:$0xff]   ;;  %v2477_v55 = vld [vmem:[%s3520_s0 + $0xac] ss:$12 sps:$4 sm:$0xff]  }
  0x13   :  { %697 = vmatprep.subr.bf16.mxu0 %v2625_v0  ;;  %v2474_v54 = vld [vmem:[%s3520_s0 + $0x90] ss:$12 sps:$4 sm:$0xff]   ;;  %v2479_v56 = vld [vmem:[%s3520_s0 + $0xa8] ss:$12 sps:$4 sm:$0xff]   ;;  %v2485_v58 = vld [vmem:[%s3520_s0 + $0xc0] ss:$12 sps:$4 sm:$0xff]  }
  0x14   :  { %v2483_v57 = vld [vmem:[%s3520_s0 + $0xc4] ss:$12 sps:$4 sm:$0xff]   ;;  %v2486_v59 = vld [vmem:[%s3520_s0 + $0xdc] ss:$12 sps:$4 sm:$0xff]   ;;  %v2491_v61 = vld [vmem:[%s3520_s0 + $0xf4] ss:$12 sps:$4 sm:$0xff]  }
  0x15   :  { %2428 = vmatpush3.bf16.msra.mxu1 %v2718_v16  ;;  %v2488_v60 = vld [vmem:[%s3520_s0 + $0xd8] ss:$12 sps:$4 sm:$0xff]   ;;  %v2493_v62 = vld [vmem:[%s3520_s0 + $0xf0] ss:$12 sps:$4 sm:$0xff]   ;;  %v2496_v1 = vld [vmem:[%s3520_s0 + $0x108] ss:$12 sps:$4 sm:$0xff]  }
  0x16   :  { %698 = vmatpush1.bf16.msra.mxu0 %v2438_v7  ;;  %2421 = vmatprep.subr.bf16.mxu1 %v2732_v19  ;;  %v2494_v63 = vld [vmem:[%s3520_s0 + $0x10c] ss:$12 sps:$4 sm:$0xff]   ;;  %v2499_v2 = vld [vmem:[%s3520_s0 + $0x124] ss:$12 sps:$4 sm:$0xff]   ;;  %v2502_v4 = vld [vmem:[%s3520_s0 + $0x13c] ss:$12 sps:$4 sm:$0xff]  }
  0x17   :  { %699 = vmatprep.subr.bf16.mxu0 %v2625_v0  ;;  %v2501_v3 = vld [vmem:[%s3520_s0 + $0x120] ss:$12 sps:$4 sm:$0xff]   ;;  %v2504_v5 = vld [vmem:[%s3520_s0 + $0x138] ss:$12 sps:$4 sm:$0xff]   ;;  %v2509_v7 = vld [vmem:[%s3520_s0 + $0x150] ss:$12 sps:$4 sm:$0xff]  }
  0x18   :  { %v2507_v6 = vld [vmem:[%s3520_s0 + $0x154] ss:$12 sps:$4 sm:$0xff]  }
  0x19   :  { %2429 = vmatpush3.bf16.msra.mxu1 %v2732_v19  ;;  %v2528_v17 = vld [vmem:[%s3520_s0 + $0x1c8] ss:$12 sps:$4 sm:$0xff]  }
  0x1a   :  { %700 = vmatpush1.bf16.msra.mxu0 %v2439_v8  ;;  %2422 = vmatprep.subr.bf16.mxu1 %v2743_v21  ;;  %v2510_v8 = vld [vmem:[%s3520_s0 + $0x16c] ss:$12 sps:$4 sm:$0xff]  }
  0x1b   :  { %701 = vmatprep.subr.bf16.mxu0 %v2625_v0 }
  0x1d   :  { %2430 = vmatpush3.bf16.msra.mxu1 %v2743_v21 }
  0x1e   :  { %702 = vmatpush1.bf16.msra.mxu0 %v2440_v11  ;;  %2423 = vmatprep.subr.bf16.mxu1 %v2754_v23  ;;  %v2517_v11 = vld [vmem:[%s3520_s0 + $0x180] ss:$12 sps:$4 sm:$0xff]  }
  0x1f   :  { %703 = vmatprep.subr.bf16.mxu0 %v2625_v0 }
  0x21   :  { %2431 = vmatpush3.bf16.msra.mxu1 %v2754_v23 }
  0x22   :  { %704 = vmatpush2.bf16.msra.mxu0 %v2441_v13  ;;  %v2520_v13 = vld [vmem:[%s3520_s0 + $0x198] ss:$12 sps:$4 sm:$0xff]  }
  0x23   :  { %705 = vmatprep.subr.bf16.mxu0 %v2625_v0 }
  0x24   :  { %2257 = vmatmul.mubr.bf16.vlgmr.msra.gmra.mxu1 %v2482_v26  ;;  %v2545_v26 = vld [vmem:[%s3520_s0 + $0x8] ss:$12 sps:$4 sm:$0xff]  }
  0x25   :  { %2260 = vmatprep.mubr.bf16.mxu1 %v2489_v27  ;;  %v2980_v27 = vld [vmem:[%s3520_s0 + $0x20] ss:$12 sps:$4 sm:$0xff]  }
  0x26   :  { %706 = vmatpush2.bf16.msra.mxu0 %v2442_v15  ;;  %v2525_v15 = vld [vmem:[%s3520_s0 + $0x1b0] ss:$12 sps:$4 sm:$0xff]  }
  0x27   :  { %707 = vmatprep.subr.bf16.mxu0 %v2625_v0 }
  0x2a   :  { %708 = vmatpush2.bf16.msra.mxu0 %v2443_v18  ;;  %v2531_v18 = vld [vmem:[%s3520_s0 + $0x1e4] ss:$12 sps:$4 sm:$0xff]  }
  0x2b   :  { %709 = vmatprep.subr.bf16.mxu0 %v2625_v0 }
  0x2c   :  { %2261 = vmatmul.mubr.bf16.gmra.mxu1 %v2490_v29 }
  0x2d   :  { %2264 = vmatprep.mubr.bf16.mxu1 %v2497_v31 }
  0x2e   :  { %710 = vmatpush2.bf16.msra.mxu0 %v2444_v20  ;;  %v2534_v20 = vld [vmem:[%s3520_s0 + $0x1fc] ss:$12 sps:$4 sm:$0xff]  }
  0x2f   :  { %711 = vmatprep.subr.bf16.mxu0 %v2625_v0 }
  0x32   :  { %712 = vmatpush2.bf16.msra.mxu0 %v2445_v22  ;;  %v2539_v22 = vld [vmem:[%s3520_s0 + $0x214] ss:$12 sps:$4 sm:$0xff]  }
  0x33   :  { %713 = vmatprep.subr.bf16.mxu0 %v2625_v0 }
  0x34   :  { %2265 = vmatmul.mubr.bf16.gmra.mxu1 %v2498_v33  ;;  %v3001_v33 = vld [vmem:[%s3520_s0 + $0x68] ss:$12 sps:$4 sm:$0xff]  }
  0x35   :  { %2268 = vmatprep.mubr.bf16.mxu1 %v2505_v35 }
  0x36   :  { %714 = vmatpush2.bf16.msra.mxu0 %v2446_v24  ;;  %v2542_v24 = vld [vmem:[%s3520_s0 + $0x22c] ss:$12 sps:$4 sm:$0xff]  }
  0x37   :  { %715 = vmatprep.subr.bf16.mxu0 %v2625_v0 }
  0x3a   :  { %716 = vmatpush2.bf16.msra.mxu0 %v2447_v25  ;;  %v2544_v25 = vld [vmem:[%s3520_s0 + $0x228] ss:$12 sps:$4 sm:$0xff]  }
  0x3b   :  { %717 = vmatprep.subr.bf16.mxu0 %v2625_v0 }
  0x3c   :  { %2269 = vmatmul.mubr.bf16.gmra.mxu1 %v2506_v37 }
  0x3d   :  { %2272 = vmatprep.mubr.bf16.mxu1 %v2513_v39  ;;  %v3017_v39 = vld [vmem:[%s3520_s0 + $0x98] ss:$12 sps:$4 sm:$0xff]  }
  0x3e   :  { %718 = vmatpush2.bf16.msra.mxu0 %v2448_v28  ;;  %v2985_v28 = vld [vmem:[%s3520_s0 + $0x38] ss:$12 sps:$4 sm:$0xff]  }
  0x3f   :  { %2224 = vmatprep.subr.bf16.mxu0 %v2679_v9 }
  0x41   :  { %720 = vmatmul.mubr.bf16.vlgmr.msra.gmra.mxu0 %v2449_v30 }
  0x42   :  { %727 = vmatprep.mubr.bf16.mxu0 %v2452_v32  ;;  %2225 = vmatpush3.bf16.msra.mxu0 %v2679_v9  ;;  %v2512_v9 = vld [vmem:[%s3520_s0 + $0x168] ss:$12 sps:$4 sm:$0xff]   ;;  %v2996_v32 = vld [vmem:[%s3520_s0 + $0x50] ss:$12 sps:$4 sm:$0xff]  }
  0x43   :  { %2226 = vmatprep.subr.bf16.mxu0 %v2686_v10 }
  0x44   :  { %2273 = vmatmul.mubr.bf16.gmra.mxu1 %v2514_v41 }
  0x45   :  { %2276 = vmatprep.mubr.bf16.mxu1 %v2521_v43 }
  0x46   :  { %2227 = vmatpush3.bf16.msra.mxu0 %v2686_v10  ;;  %v2515_v10 = vld [vmem:[%s3520_s0 + $0x184] ss:$12 sps:$4 sm:$0xff]  }
  0x47   :  { %2228 = vmatprep.subr.bf16.mxu0 %v2696_v12 }
  0x49   :  { %728 = vmatmul.mubr.bf16.gmra.mxu0 %v2454_v34 }
  0x4a   :  { %735 = vmatprep.mubr.bf16.mxu0 %v2455_v36  ;;  %2229 = vmatpush3.bf16.msra.mxu0 %v2696_v12  ;;  %v2518_v12 = vld [vmem:[%s3520_s0 + $0x19c] ss:$12 sps:$4 sm:$0xff]  }
  0x4b   :  { %2230 = vmatprep.subr.bf16.mxu0 %v2707_v14 }
  0x4c   :  { %2277 = vmatmul.mubr.bf16.gmra.mxu1 %v2522_v45 }
  0x4d   :  { %2280 = vmatprep.mubr.bf16.mxu1 %v2529_v47 }
  0x4e   :  { %2231 = vmatpush3.bf16.msra.mxu0 %v2707_v14  ;;  %v2523_v14 = vld [vmem:[%s3520_s0 + $0x1b4] ss:$12 sps:$4 sm:$0xff]  }
  0x4f   :  { %2232 = vmatprep.subr.bf16.mxu0 %v2718_v16 }
  0x51   :  { %736 = vmatmul.mubr.bf16.gmra.mxu0 %v2457_v38  ;;  %v3012_v38 = vld [vmem:[%s3520_s0 + $0x80] ss:$12 sps:$4 sm:$0xff]  }
  0x52   :  { %743 = vmatprep.mubr.bf16.mxu0 %v2458_v40  ;;  %2233 = vmatpush3.bf16.msra.mxu0 %v2718_v16  ;;  %v2526_v16 = vld [vmem:[%s3520_s0 + $0x1cc] ss:$12 sps:$4 sm:$0xff]  }
  0x53   :  { %2234 = vmatprep.subr.bf16.mxu0 %v2732_v19 }
  0x54   :  { %2281 = vmatmul.mubr.bf16.gmra.mxu1 %v2530_v49 }
  0x55   :  { %2284 = vmatprep.mubr.bf16.mxu1 %v2537_v52 }
  0x56   :  { %2235 = vmatpush3.bf16.msra.mxu0 %v2732_v19  ;;  %v2533_v19 = vld [vmem:[%s3520_s0 + $0x1e0] ss:$12 sps:$4 sm:$0xff]  }
  0x57   :  { %2236 = vmatprep.subr.bf16.mxu0 %v2743_v21 }
  0x59   :  { %744 = vmatmul.mubr.bf16.gmra.mxu0 %v2460_v42 }
  0x5a   :  { %751 = vmatprep.mubr.bf16.mxu0 %v2462_v44  ;;  %2237 = vmatpush3.bf16.msra.mxu0 %v2743_v21  ;;  %v2536_v21 = vld [vmem:[%s3520_s0 + $0x1f8] ss:$12 sps:$4 sm:$0xff]   ;;  %v3028_v44 = vld [vmem:[%s3520_s0 + $0xb0] ss:$12 sps:$4 sm:$0xff]  }
  0x5b   :  { %2238 = vmatprep.subr.bf16.mxu0 %v2754_v23 }
  0x5c   :  { %2285 = vmatmul.mubr.bf16.gmra.mxu1 %v2538_v53 }
  0x5e   :  { %2239 = vmatpush3.bf16.msra.mxu0 %v2754_v23  ;;  %v2541_v23 = vld [vmem:[%s3520_s0 + $0x210] ss:$12 sps:$4 sm:$0xff]  }
  0x61   :  { %752 = vmatmul.mubr.bf16.gmra.mxu0 %v2464_v46 }
  0x62   :  { %759 = vmatprep.mubr.bf16.mxu0 %v2467_v48 }
  0x69   :  { %760 = vmatmul.mubr.bf16.gmra.mxu0 %v2469_v50 }
  0x6a   :  { %767 = vmatprep.mubr.bf16.mxu0 %v2472_v51 }
  0x71   :  { %768 = vmatmul.mubr.bf16.gmra.mxu0 %v2474_v54 }
  0x72   :  { %775 = vmatprep.mubr.bf16.mxu0 %v2477_v55 }
  0x79   :  { %776 = vmatmul.mubr.bf16.gmra.mxu0 %v2479_v56 }
  0x7a   :  { %783 = vmatprep.mubr.bf16.mxu0 %v2483_v57  ;;  %v2553_v57 = vld [vmem:[%s3521_s2 + $0x38] sm:$0xff]  }
  0x7b   :  { %2288 = vmatprep.subr.bf16.mxu1 %v2553_v57 }
  0x7c   :  { %2289 = vmatpush3.bf16.msra.mxu1 %v2553_v57 }
  0x81   :  { %784 = vmatmul.mubr.bf16.gmra.mxu0 %v2485_v58 }
  0x82   :  { %791 = vmatprep.mubr.bf16.mxu0 %v2486_v59 }
  0x89   :  { %792 = vmatmul.mubr.bf16.gmra.mxu0 %v2488_v60  ;;  %v2554_v60 = vld [vmem:[%s3521_s2 + $0x30] sm:$0xff]  }
  0x8a   :  { %799 = vmatprep.mubr.bf16.mxu0 %v2491_v61  ;;  %2290 = vmatprep.subr.bf16.mxu1 %v2554_v60 }
  0x8b   :  { %2291 = vmatpush3.bf16.msra.mxu1 %v2554_v60 }
  0x91   :  { %800 = vmatmul.mubr.bf16.gmra.mxu0 %v2493_v62 }
  0x92   :  { %807 = vmatprep.mubr.bf16.mxu0 %v2494_v63  ;;  %v2555_v63 = vld [vmem:[%s3521_s2 + $0x28] sm:$0xff]  }
  0x93   :  { %2292 = vmatprep.subr.bf16.mxu1 %v2555_v63 }
  0x94   :  { %2293 = vmatpush3.bf16.msra.mxu1 %v2555_v63 }
  0x99   :  { %808 = vmatmul.mubr.bf16.gmra.mxu0 %v2496_v1 }
  0x9a   :  { %815 = vmatprep.mubr.bf16.mxu0 %v2499_v2 }
  0xa1   :  { %816 = vmatmul.mubr.bf16.gmra.mxu0 %v2501_v3 }
  0xa2   :  { %823 = vmatprep.mubr.bf16.mxu0 %v2502_v4  ;;  %v2556_v4 = vld [vmem:[%s3521_s2 + $0x20] sm:$0xff]  }
  0xa3   :  { %2294 = vmatprep.subr.bf16.mxu1 %v2556_v4 }
  0xa4   :  { %2295 = vmatpush3.bf16.msra.mxu1 %v2556_v4 }
  0xa9   :  { %824 = vmatmul.mubr.bf16.gmra.mxu0 %v2504_v5 }
  0xaa   :  { %831 = vmatprep.mubr.bf16.mxu0 %v2507_v6 }
  0xb1   :  { %832 = vmatmul.mubr.bf16.gmra.mxu0 %v2509_v7 }
  0xb2   :  { %839 = vmatprep.mubr.bf16.mxu0 %v2510_v8  ;;  %v2557_v8 = vld [vmem:[%s3521_s2 + $0x18] sm:$0xff]  }
  0xb3   :  { %2296 = vmatprep.subr.bf16.mxu1 %v2557_v8 }
  0xb4   :  { %2297 = vmatpush3.bf16.msra.mxu1 %v2557_v8 }
  0xb9   :  { %840 = vmatmul.mubr.bf16.gmra.mxu0 %v2512_v9 }
  0xba   :  { %847 = vmatprep.mubr.bf16.mxu0 %v2515_v10 }
  0xc1   :  { %848 = vmatmul.mubr.bf16.gmra.mxu0 %v2517_v11 }
  0xc2   :  { %855 = vmatprep.mubr.bf16.mxu0 %v2518_v12  ;;  %v2558_v12 = vld [vmem:[%s3521_s2 + $0x10] sm:$0xff]  }
  0xc3   :  { %2298 = vmatprep.subr.bf16.mxu1 %v2558_v12 }
  0xc4   :  { %2299 = vmatpush3.bf16.msra.mxu1 %v2558_v12 }
  0xc9   :  { %856 = vmatmul.mubr.bf16.gmra.mxu0 %v2520_v13 }
  0xca   :  { %863 = vmatprep.mubr.bf16.mxu0 %v2523_v14 }
  0xd1   :  { %864 = vmatmul.mubr.bf16.gmra.mxu0 %v2525_v15 }
  0xd2   :  { %871 = vmatprep.mubr.bf16.mxu0 %v2526_v16 }
  0xd9   :  { %872 = vmatmul.mubr.bf16.gmra.mxu0 %v2528_v17  ;;  %v2559_v17 = vld [vmem:[%s3521_s2 + $0x8] sm:$0xff]  }
  0xda   :  { %879 = vmatprep.mubr.bf16.mxu0 %v2531_v18  ;;  %2300 = vmatprep.subr.bf16.mxu1 %v2559_v17 }
  0xdb   :  { %2301 = vmatpush3.bf16.msra.mxu1 %v2559_v17 }
  0xe1   :  { %880 = vmatmul.mubr.bf16.gmra.mxu0 %v2533_v19 }
  0xe2   :  { %887 = vmatprep.mubr.bf16.mxu0 %v2534_v20 }
  0xe4   :  { %v2258_v2 = vpop.f32.mrf.mxu1 }
  0xe6   :  { %v1010_v6 = vpop.f32.mrf.mxu1 }
  0xe8   :  { %v2259_v10 = vpop.f32.mrf.mxu1 }
  0xe9   :  { %888 = vmatmul.mubr.bf16.gmra.mxu0 %v2536_v21 }
  0xea   :  { %895 = vmatprep.mubr.bf16.mxu0 %v2539_v22  ;;  %v1013_v14 = vpop.f32.mrf.mxu1 }
  0xec   :  { %v2262_v20 = vpop.f32.mrf.mxu1 }
  0xf1   :  { %896 = vmatmul.mubr.bf16.gmra.mxu0 %v2541_v23 }
  0xf2   :  { %903 = vmatprep.mubr.bf16.mxu0 %v2542_v24  ;;  %v2560_v24 = vld [vmem:[%s3521_s2] sm:$0xff]  }
  0xf3   :  { %2302 = vmatprep.subr.bf16.mxu1 %v2560_v24 }
  0xf4   :  { %2303 = vmatpush3.bf16.msra.mxu1 %v2560_v24 }
  0xf5   :  { %1522 = vmatprep.subr.bf16.mxu1 %v2625_v0 }
  0xf9   :  { %904 = vmatmul.mubr.bf16.gmra.mxu0 %v2544_v25 }
  0xfa   :  { %2240 = vmatprep.mubr.bf16.mxu0 %v2545_v26 }
 0x101   :  { %v2987_v29 = vpop.f32.mrf.mxu0  ;;  %2241 = vmatmul.mubr.bf16.vlgmr.msra.gmra.mxu0 %v2980_v27 }
 0x102   :  { %2244 = vmatprep.mubr.bf16.mxu0 %v2985_v28 }
 0x103   :  { %v723_v30 = vpop.f32.mrf.mxu0 }
 0x104   :  { %v1026_v30 = vpop.f32.mrf.mxu1 }
 0x105   :  { %v2991_v31 = vpop.f32.mrf.mxu0 }
 0x107   :  { %v726_v34 = vpop.f32.mrf.mxu0 }
 0x109   :  { %v3003_v35 = vpop.f32.mrf.mxu0  ;;  %2245 = vmatmul.mubr.bf16.gmra.mxu0 %v2996_v32 }
 0x10a   :  { %2248 = vmatprep.mubr.bf16.mxu0 %v3001_v33 }
 0x10b   :  { %v731_v36 = vpop.f32.mrf.mxu0 }
 0x10d   :  { %v3007_v37 = vpop.f32.mrf.mxu0 }
 0x10f   :  { %v734_v40 = vpop.f32.mrf.mxu0 }
 0x111   :  { %v3019_v41 = vpop.f32.mrf.mxu0  ;;  %2249 = vmatmul.mubr.bf16.gmra.mxu0 %v3012_v38 }
 0x112   :  { %2252 = vmatprep.mubr.bf16.mxu0 %v3017_v39 }
 0x113   :  { %v739_v42 = vpop.f32.mrf.mxu0 }
 0x115   :  { %v3023_v43 = vpop.f32.mrf.mxu0 }
 0x117   :  { %v742_v45 = vpop.f32.mrf.mxu0 }
 0x118   :  { %v2263_v45 = vpop.f32.mrf.mxu1 }
 0x119   :  { %v3030_v46 = vpop.f32.mrf.mxu0  ;;  %2253 = vmatmul.mubr.bf16.gmra.mxu0 %v3028_v44 }
 0x11a   :  { %2368 = vmatprep.mubr.bf16.mxu0 %v2545_v26  ;;  %v1029_v57 = vpop.f32.mrf.mxu1 }
 0x11b   :  { %v747_v47 = vpop.f32.mrf.mxu0 }
 0x11d   :  { %v3033_v48 = vpop.f32.mrf.mxu0 }
 0x11f   :  { %v750_v49 = vpop.f32.mrf.mxu0 }
 0x121   :  { %v3035_v50 = vpop.f32.mrf.mxu0 }
 0x123   :  { %v755_v51 = vpop.f32.mrf.mxu0 }
 0x125   :  { %v3037_v52 = vpop.f32.mrf.mxu0 }
 0x127   :  { %v758_v53 = vpop.f32.mrf.mxu0 }
 0x129   :  { %v3039_v54 = vpop.f32.mrf.mxu0 }
 0x12b   :  { %v763_v55 = vpop.f32.mrf.mxu0 }
 0x12d   :  { %v3041_v56 = vpop.f32.mrf.mxu0 }
 0x12f   :  { %v766_v58 = vpop.f32.mrf.mxu0 }
 0x131   :  { %v3046_v59 = vpop.f32.mrf.mxu0 }
 0x133   :  { %v771_v61 = vpop.f32.mrf.mxu0 }
 0x135   :  { %v3051_v62 = vpop.f32.mrf.mxu0 }
 0x137   :  { %v774_v1 = vpop.f32.mrf.mxu0 }
 0x138   :  { %v2266_v1 = vpop.f32.mrf.mxu1 }
 0x139   :  { %v3056_v3 = vpop.f32.mrf.mxu0 }
 0x13b   :  { %v779_v5 = vpop.f32.mrf.mxu0 }
 0x13d   :  { %v3061_v7 = vpop.f32.mrf.mxu0 }
 0x13f   :  { %v782_v9 = vpop.f32.mrf.mxu0 }
 0x140   :  { %v1042_v9 = vpop.f32.mrf.mxu1 }
 0x141   :  { %v785_v11 = vpop.f32.mrf.mxu0 }
 0x142   :  { %v1011_v15 = vadd.f32 %v1010_v6, %v785_v11 }
 0x143   :  { %v787_v13 = vpop.f32.mrf.mxu0 }
 0x144   :  { %v1153_v21 = vmax.f32 %v1011_v15, 0.0 }
 0x145   :  { %v788_v16 = vpop.f32.mrf.mxu0 }
 0x146   :  { %v1014_v18 = vadd.f32 %v1013_v14, %v788_v16  ;;  %v2267_v14 = vpop.f32.mrf.mxu1 }
 0x147   :  { %v790_v19 = vpop.f32.mrf.mxu0 }
 0x148   :  { %v1154_v22 = vmax.f32 %v1014_v18, 0.0 }
 0x149   :  { %v793_v23 = vpop.f32.mrf.mxu0 }
 0x14a   :  { %v3075_v25 = vpack.c.bf16 %v1154_v22, %v1153_v21  ;;  %v1019_v34 = vadd.f32 %v2258_v2, %v793_v23  ;;  %v1045_v21 = vpop.f32.mrf.mxu1 }
 0x14b   :  { %v795_v26 = vpop.f32.mrf.mxu0 }
 0x14c   :  { %v1155_v47 = vmax.f32 %v1019_v34, 0.0 }
 0x14d   :  { %v796_v36 = vpop.f32.mrf.mxu0 }
 0x14e   :  { %v1022_v40 = vadd.f32 %v2259_v10, %v796_v36 }
 0x14f   :  { %v798_v42 = vpop.f32.mrf.mxu0 }
 0x150   :  { %v1156_v49 = vmax.f32 %v1022_v40, 0.0 }
 0x151   :  { %v801_v51 = vpop.f32.mrf.mxu0 }
 0x152   :  { %v3078_v53 = vpack.c.bf16 %v1156_v49, %v1155_v47  ;;  %v1027_v58 = vadd.f32 %v1026_v30, %v801_v51  ;;  %v2270_v30 = vpop.f32.mrf.mxu1 }
 0x153   :  { %v803_v55 = vpop.f32.mrf.mxu0 }
 0x154   :  { %v1157_v2 = vmax.f32 %v1027_v58, 0.0 }
 0x155   :  { %v804_v60 = vpop.f32.mrf.mxu0 }
 0x156   :  { %v1030_v61 = vadd.f32 %v1029_v57, %v804_v60 }
 0x157   :  { %v806_v63 = vpop.f32.mrf.mxu0 }
 0x158   :  { %v1158_v4 = vmax.f32 %v1030_v61, 0.0 }
 0x159   :  { %v809_v5 = vpop.f32.mrf.mxu0 }
 0x15a   :  { %v3080_v6 = vpack.c.bf16 %v1158_v4, %v1157_v2  ;;  %v1035_v10 = vadd.f32 %v2262_v20, %v809_v5 }
 0x15b   :  { %v811_v8 = vpop.f32.mrf.mxu0 }
 0x15c   :  { %v1159_v15 = vmax.f32 %v1035_v10, 0.0 }
 0x15d   :  { %v812_v11 = vpop.f32.mrf.mxu0 }
 0x15e   :  { %v1038_v12 = vadd.f32 %v2263_v45, %v812_v11  ;;  %v1058_v45 = vpop.f32.mrf.mxu1 }
 0x15f   :  { %v814_v13 = vpop.f32.mrf.mxu0 }
 0x160   :  { %v1160_v16 = vmax.f32 %v1038_v12, 0.0  ;;  %v2271_v57 = vpop.f32.mrf.mxu1 }
 0x161   :  { %v817_v17 = vpop.f32.mrf.mxu0 }
 0x162   :  { %v3082_v18 = vpack.c.bf16 %v1160_v16, %v1159_v15  ;;  %v1043_v22 = vadd.f32 %v1042_v9, %v817_v17  ;;  %v1061_v4 = vpop.f32.mrf.mxu1 }
 0x163   :  { %v819_v19 = vpop.f32.mrf.mxu0 }
 0x164   :  { %v1161_v34 = vmax.f32 %v1043_v22, 0.0  ;;  %v2274_v11 = vpop.f32.mrf.mxu1 }
 0x165   :  { %v820_v23 = vpop.f32.mrf.mxu0 }
 0x166   :  { %v1046_v24 = vadd.f32 %v1045_v21, %v820_v23  ;;  %v1074_v16 = vpop.f32.mrf.mxu1 }
 0x167   :  { %v822_v26 = vpop.f32.mrf.mxu0 }
 0x168   :  { %v1162_v36 = vmax.f32 %v1046_v24, 0.0  ;;  %v2275_v23 = vpop.f32.mrf.mxu1 }
 0x169   :  { %v825_v40 = vpop.f32.mrf.mxu0 }
 0x16a   :  { %v3084_v20 = vpack.c.bf16 %v1162_v36, %v1161_v34  ;;  %v1051_v47 = vadd.f32 %v2266_v1, %v825_v40 }
 0x16b   :  { %v827_v42 = vpop.f32.mrf.mxu0 }
 0x16c   :  { %v1163_v58 = vmax.f32 %v1051_v47, 0.0  ;;  %v1077_v42 = vpop.f32.mrf.mxu1 }
 0x16d   :  { %v828_v49 = vpop.f32.mrf.mxu0 }
 0x16e   :  { %v1054_v51 = vadd.f32 %v2267_v14, %v828_v49 }
 0x16f   :  { %v830_v55 = vpop.f32.mrf.mxu0 }
 0x170   :  { %v1164_v60 = vmax.f32 %v1054_v51, 0.0  ;;  %v2278_v55 = vpop.f32.mrf.mxu1 }
 0x171   :  { %v833_v61 = vpop.f32.mrf.mxu0 }
 0x172   :  { %v3086_v63 = vpack.c.bf16 %v1164_v60, %v1163_v58  ;;  %v1059_v5 = vadd.f32 %v1058_v45, %v833_v61 }
 0x173   :  { %v835_v2 = vpop.f32.mrf.mxu0 }
 0x174   :  { %v1165_v12 = vmax.f32 %v1059_v5, 0.0  ;;  %v1090_v2 = vpop.f32.mrf.mxu1 }
 0x175   :  { %v836_v8 = vpop.f32.mrf.mxu0 }
 0x176   :  { %v1062_v9 = vadd.f32 %v1061_v4, %v836_v8 }
 0x177   :  { %v838_v10 = vpop.f32.mrf.mxu0 }
 0x178   :  { %v1166_v13 = vmax.f32 %v1062_v9, 0.0  ;;  %v2279_v10 = vpop.f32.mrf.mxu1 }
 0x179   :  { %v841_v15 = vpop.f32.mrf.mxu0 }
 0x17a   :  { %v3088_v1 = vpack.c.bf16 %v1166_v13, %v1165_v12  ;;  %v1067_v17 = vadd.f32 %v2270_v30, %v841_v15 }
 0x17b   :  { %v843_v14 = vpop.f32.mrf.mxu0 }
 0x17c   :  { %v1167_v24 = vmax.f32 %v1067_v17, 0.0  ;;  %v1093_v17 = vpop.f32.mrf.mxu1 }
 0x17d   :  { %v844_v19 = vpop.f32.mrf.mxu0 }
 0x17e   :  { %v1070_v21 = vadd.f32 %v2271_v57, %v844_v19 }
 0x17f   :  { %v846_v22 = vpop.f32.mrf.mxu0 }
 0x180   :  { %v1168_v26 = vmax.f32 %v1070_v21, 0.0 }
 0x181   :  { %v849_v34 = vpop.f32.mrf.mxu0 }
 0x182   :  { %v3090_v36 = vpack.c.bf16 %v1168_v26, %v1167_v24  ;;  %v1075_v45 = vadd.f32 %v1074_v16, %v849_v34  ;;  %v2282_v26 = vpop.f32.mrf.mxu1 }
 0x183   :  { %v851_v40 = vpop.f32.mrf.mxu0 }
 0x184   :  { %v1169_v58 = vmax.f32 %v1075_v45, 0.0  ;;  %v1106_v45 = vpop.f32.mrf.mxu1 }
 0x185   :  { %v852_v47 = vpop.f32.mrf.mxu0 }
 0x186   :  { %v1078_v49 = vadd.f32 %v1077_v42, %v852_v47 }
 0x187   :  { %v854_v51 = vpop.f32.mrf.mxu0 }
 0x188   :  { %v1170_v60 = vmax.f32 %v1078_v49, 0.0 }
 0x189   :  { %v857_v61 = vpop.f32.mrf.mxu0 }
 0x18a   :  { %v3092_v30 = vpack.c.bf16 %v1170_v60, %v1169_v58  ;;  %v1083_v4 = vadd.f32 %v2274_v11, %v857_v61  ;;  %v2283_v60 = vpop.f32.mrf.mxu1 }
 0x18b   :  { %v859_v57 = vpop.f32.mrf.mxu0 }
 0x18c   :  { %v1171_v12 = vmax.f32 %v1083_v4, 0.0 }
 0x18d   :  { %v860_v5 = vpop.f32.mrf.mxu0 }
 0x18e   :  { %v1086_v8 = vadd.f32 %v2275_v23, %v860_v5 }
 0x18f   :  { %v862_v9 = vpop.f32.mrf.mxu0 }
 0x190   :  { %v1172_v13 = vmax.f32 %v1086_v8, 0.0  ;;  %v1109_v8 = vpop.f32.mrf.mxu1 }
 0x191   :  { %v865_v15 = vpop.f32.mrf.mxu0 }
 0x192   :  { %v3094_v14 = vpack.c.bf16 %v1172_v13, %v1171_v12  ;;  %v1091_v19 = vadd.f32 %v1090_v2, %v865_v15 }
 0x193   :  { %v867_v16 = vpop.f32.mrf.mxu0 }
 0x194   :  { %v1173_v34 = vmax.f32 %v1091_v19, 0.0  ;;  %v2286_v16 = vpop.f32.mrf.mxu1 }
 0x195   :  { %v868_v21 = vpop.f32.mrf.mxu0 }
 0x196   :  { %v1094_v22 = vadd.f32 %v1093_v17, %v868_v21 }
 0x197   :  { %v870_v24 = vpop.f32.mrf.mxu0 }
 0x198   :  { %v1174_v40 = vmax.f32 %v1094_v22, 0.0  ;;  %v1122_v22 = vpop.f32.mrf.mxu1 }
 0x199   :  { %v873_v42 = vpop.f32.mrf.mxu0 }
 0x19a   :  { %v3096_v11 = vpack.c.bf16 %v1174_v40, %v1173_v34  ;;  %v1099_v47 = vadd.f32 %v2278_v55, %v873_v42 }
 0x19b   :  { %v875_v23 = vpop.f32.mrf.mxu0 }
 0x19c   :  { %v1175_v61 = vmax.f32 %v1099_v47, 0.0  ;;  %v2287_v23 = vpop.f32.mrf.mxu1 }
 0x19d   :  { %v876_v49 = vpop.f32.mrf.mxu0 }
 0x19e   :  { %v1102_v51 = vadd.f32 %v2279_v10, %v876_v49 }
 0x19f   :  { %v878_v58 = vpop.f32.mrf.mxu0 }
 0x1a0   :  { %v1176_v57 = vmax.f32 %v1102_v51, 0.0 }
 0x1a1   :  { %v881_v4 = vpop.f32.mrf.mxu0 }
 0x1a2   :  { %v3098_v2 = vpack.c.bf16 %v1176_v57, %v1175_v61  ;;  %v1107_v9 = vadd.f32 %v1106_v45, %v881_v4  ;;  %v1125_v61 = vpop.f32.mrf.mxu1 }
 0x1a3   :  { %v883_v5 = vpop.f32.mrf.mxu0 }
 0x1a4   :  { %v1177_v17 = vmax.f32 %v1107_v9, 0.0 }
 0x1a5   :  { %v884_v12 = vpop.f32.mrf.mxu0 }
 0x1a6   :  { %v1110_v13 = vadd.f32 %v1109_v8, %v884_v12 }
 0x1a7   :  { %v886_v15 = vpop.f32.mrf.mxu0 }
 0x1a8   :  { %v1178_v19 = vmax.f32 %v1110_v13, 0.0 }
 0x1a9   :  { %v889_v21 = vpop.f32.mrf.mxu0 }
 0x1aa   :  { %v3100_v55 = vpack.c.bf16 %v1178_v19, %v1177_v17  ;;  %v1115_v24 = vadd.f32 %v2282_v26, %v889_v21 }
 0x1ab   :  { %v891_v10 = vpop.f32.mrf.mxu0 }
 0x1ac   :  { %v1179_v47 = vmax.f32 %v1115_v24, 0.0 }
 0x1ad   :  { %v892_v34 = vpop.f32.mrf.mxu0 }
 0x1ae   :  { %v1118_v40 = vadd.f32 %v2283_v60, %v892_v34 }
 0x1af   :  { %v894_v42 = vpop.f32.mrf.mxu0 }
 0x1b0   :  { %v1180_v49 = vmax.f32 %v1118_v40, 0.0 }
 0x1b1   :  { %v897_v51 = vpop.f32.mrf.mxu0 }
 0x1b2   :  { %v3102_v45 = vpack.c.bf16 %v1180_v49, %v1179_v47  ;;  %v1123_v57 = vadd.f32 %v1122_v22, %v897_v51 }
 0x1b3   :  { %v899_v58 = vpop.f32.mrf.mxu0 }
 0x1b4   :  { %v1181_v9 = vmax.f32 %v1123_v57, 0.0 }
 0x1b5   :  { %v900_v4 = vpop.f32.mrf.mxu0 }
 0x1b6   :  { %v1126_v5 = vadd.f32 %v1125_v61, %v900_v4 }
 0x1b7   :  { %v902_v8 = vpop.f32.mrf.mxu0 }
 0x1b8   :  { %v1182_v12 = vmax.f32 %v1126_v5, 0.0 }
 0x1b9   :  { %v905_v13 = vpop.f32.mrf.mxu0 }
 0x1ba   :  { %v3104_v15 = vpack.c.bf16 %v1182_v12, %v1181_v9  ;;  %v1131_v60 = vadd.f32 %v2286_v16, %v905_v13 }
 0x1bb   :  { %v907_v26 = vpop.f32.mrf.mxu0 }
 0x1bc   :  { %v1183_v10 = vmax.f32 %v1131_v60, 0.0 }
 0x1bd   :  { %v908_v17 = vpop.f32.mrf.mxu0 }
 0x1be   :  { %v1134_v19 = vadd.f32 %v2287_v23, %v908_v17 }
 0x1bf   :  { %v910_v21 = vpop.f32.mrf.mxu0 }
 0x1c0   :  { %v1184_v24 = vmax.f32 %v1134_v19, 0.0 }
 0x1c1   :  { %v2242_v34 = vpop.f32.mrf.mxu0 }
 0x1c2   :  { %v3106_v40 = vpack.c.bf16 %v1184_v24, %v1183_v10  ;;  %v955_v51 = vadd.f32 %v2242_v34, %v3003_v35 }
 0x1c3   :  { %v946_v42 = vpop.f32.mrf.mxu0 }
 0x1c4   :  { %v947_v47 = vadd.f32 %v946_v42, %v2987_v29  ;;  %v1139_v5 = vmax.f32 %v955_v51, 0.0 }
 0x1c5   :  { %v2243_v22 = vpop.f32.mrf.mxu0 }
 0x1c6   :  { %v958_v49 = vadd.f32 %v2243_v22, %v3007_v37  ;;  %v1137_v23 = vmax.f32 %v947_v47, 0.0 }
 0x1c7   :  { %v949_v58 = vpop.f32.mrf.mxu0 }
 0x1c8   :  { %v950_v61 = vadd.f32 %v949_v58, %v2991_v31  ;;  %v1140_v16 = vmax.f32 %v958_v49, 0.0 }
 0x1c9   :  { %v2246_v57 = vpop.f32.mrf.mxu0 }
 0x1ca   :  { %v1138_v4 = vmax.f32 %v950_v61, 0.0  ;;  %v1186_v12 = vpack.c.bf16 %v1140_v16, %v1139_v5  ;;  %v971_v37 = vadd.f32 %v2246_v57, %v3030_v46 }
 0x1cb   :  { %v962_v8 = vpop.f32.mrf.mxu0 }
 0x1cc   :  { %v1185_v9 = vpack.c.bf16 %v1138_v4, %v1137_v23  ;;  %v963_v26 = vadd.f32 %v962_v8, %v3019_v41  ;;  %v1143_v10 = vmax.f32 %v971_v37, 0.0 }
 0x1cd   :  { %v2247_v13 = vpop.f32.mrf.mxu0 }
 0x1ce   :  { %v974_v29 = vadd.f32 %v2247_v13, %v3033_v48  ;;  %2304 = vmatprep.mubr.bf16.mxu1 %v1185_v9  ;;  %v1141_v19 = vmax.f32 %v963_v26, 0.0 }
 0x1cf   :  { %v965_v35 = vpop.f32.mrf.mxu0  ;;  %2305 = vmatmul.mubr.bf16.vlgmr.msra.gmra.mxu1 %v1186_v12 }
 0x1d0   :  { %v966_v31 = vadd.f32 %v965_v35, %v3023_v43  ;;  %v1144_v60 = vmax.f32 %v974_v29, 0.0 }
 0x1d1   :  { %v2250_v17 = vpop.f32.mrf.mxu0 }
 0x1d2   :  { %v1142_v21 = vmax.f32 %v966_v31, 0.0  ;;  %v1188_v42 = vpack.c.bf16 %v1144_v60, %v1143_v10  ;;  %v987_v46 = vadd.f32 %v2250_v17, %v3039_v54 }
 0x1d3   :  { %v978_v24 = vpop.f32.mrf.mxu0 }
 0x1d4   :  { %v1187_v34 = vpack.c.bf16 %v1142_v21, %v1141_v19  ;;  %v979_v41 = vadd.f32 %v978_v24, %v3035_v50  ;;  %v1147_v16 = vmax.f32 %v987_v46, 0.0 }
 0x1d5   :  { %v2251_v22 = vpop.f32.mrf.mxu0 }
 0x1d6   :  { %v990_v48 = vadd.f32 %v2251_v22, %v3041_v56  ;;  %2308 = vmatprep.mubr.bf16.mxu1 %v1187_v34  ;;  %v1145_v58 = vmax.f32 %v979_v41, 0.0 }
 0x1d7   :  { %v981_v47 = vpop.f32.mrf.mxu0  ;;  %2309 = vmatmul.mubr.bf16.gmra.mxu1 %v1188_v42 }
 0x1d8   :  { %v982_v43 = vadd.f32 %v981_v47, %v3037_v52  ;;  %v1148_v49 = vmax.f32 %v990_v48, 0.0 }
 0x1d9   :  { %v2254_v51 = vpop.f32.mrf.mxu0 }
 0x1da   :  { %v1146_v61 = vmax.f32 %v982_v43, 0.0  ;;  %v1190_v4 = vpack.c.bf16 %v1148_v49, %v1147_v16  ;;  %v1003_v54 = vadd.f32 %v2254_v51, %v3056_v3 }
 0x1db   :  { %v994_v57 = vpop.f32.mrf.mxu0 }
 0x1dc   :  { %v1189_v23 = vpack.c.bf16 %v1146_v61, %v1145_v58  ;;  %v995_v50 = vadd.f32 %v994_v57, %v3046_v59  ;;  %v1151_v26 = vmax.f32 %v1003_v54, 0.0  ;;  %v2561_v59 = vld [vmem:[%s3520_s0 + $0x4] ss:$12 sps:$4 sm:$0xff]  }
 0x1dd   :  { %v2255_v5 = vpop.f32.mrf.mxu0 }
 0x1de   :  { %v1006_v56 = vadd.f32 %v2255_v5, %v3061_v7  ;;  %2312 = vmatprep.mubr.bf16.mxu1 %v1189_v23  ;;  %v1149_v12 = vmax.f32 %v995_v50, 0.0 }
 0x1df   :  { %v997_v8 = vpop.f32.mrf.mxu0  ;;  %2313 = vmatmul.mubr.bf16.gmra.mxu1 %v1190_v4 }
 0x1e0   :  { %v998_v52 = vadd.f32 %v997_v8, %v3051_v62  ;;  %v1152_v9 = vmax.f32 %v1006_v56, 0.0 }
 0x1e2   :  { %v1150_v13 = vmax.f32 %v998_v52, 0.0  ;;  %v1192_v37 = vpack.c.bf16 %v1152_v9, %v1151_v26 }
 0x1e4   :  { %v1191_v29 = vpack.c.bf16 %v1150_v13, %v1149_v12 }
 0x1e6   :  { %2316 = vmatprep.mubr.bf16.mxu1 %v1191_v29 }
 0x1e7   :  { %2317 = vmatmul.mubr.bf16.gmra.mxu1 %v1192_v37 }
 0x1e8   :  { %2320 = vmatprep.mubr.bf16.mxu1 %v3075_v25 }
 0x1ef   :  { %2321 = vmatmul.mubr.bf16.gmra.mxu1 %v3078_v53 }
 0x1f0   :  { %2324 = vmatprep.mubr.bf16.mxu1 %v3080_v6 }
 0x1f7   :  { %2325 = vmatmul.mubr.bf16.gmra.mxu1 %v3082_v18 }
 0x1f8   :  { %2328 = vmatprep.mubr.bf16.mxu1 %v3084_v20 }
 0x1ff   :  { %2329 = vmatmul.mubr.bf16.gmra.mxu1 %v3086_v63 }
 0x200   :  { %2332 = vmatprep.mubr.bf16.mxu1 %v3088_v1 }
 0x207   :  { %2333 = vmatmul.mubr.bf16.gmra.mxu1 %v3090_v36 }
 0x208   :  { %2336 = vmatprep.mubr.bf16.mxu1 %v3092_v30 }
 0x20f   :  { %2337 = vmatmul.mubr.bf16.gmra.mxu1 %v3094_v14 }
 0x210   :  { %2340 = vmatprep.mubr.bf16.mxu1 %v3096_v11 }
 0x217   :  { %2341 = vmatmul.mubr.bf16.gmra.mxu1 %v3098_v2 }
 0x218   :  { %2344 = vmatprep.mubr.bf16.mxu1 %v3100_v55 }
 0x21f   :  { %2345 = vmatmul.mubr.bf16.gmra.mxu1 %v3102_v45 }
 0x220   :  { %2348 = vmatprep.mubr.bf16.mxu1 %v3104_v15 }
 0x227   :  { %2349 = vmatmul.mubr.bf16.gmra.mxu1 %v3106_v40 }
 0x228   :  { %1554 = vmatprep.mubr.bf16.mxu1 %v2561_v59 }
 0x28f   :  { %v2306_v62 = vpop.f32.mrf.mxu1 }
 0x291   :  { %v1307_v3 = vpop.f32.mrf.mxu1 }
 0x293   :  { %v2307_v7 = vpop.f32.mrf.mxu1 }
 0x294   :  { %v1499_v47 = vpack.c.bf16 %v2307_v7, %v2306_v62 }
 0x295   :  { %v1310_v25 = vpop.f32.mrf.mxu1 }
 0x296   :  { %v1498_v51 = vpack.c.bf16 %v1310_v25, %v1307_v3 }
 0x297   :  { %v2310_v53 = vpop.f32.mrf.mxu1 }
 0x299   :  { %v1323_v6 = vpop.f32.mrf.mxu1 }
 0x29b   :  { %v2311_v18 = vpop.f32.mrf.mxu1 }
 0x29c   :  { %v1501_v34 = vpack.c.bf16 %v2311_v18, %v2310_v53 }
 0x29d   :  { %v1326_v20 = vpop.f32.mrf.mxu1 }
 0x29e   :  { %v1500_v41 = vpack.c.bf16 %v1326_v20, %v1323_v6 }
 0x29f   :  { %v2314_v63 = vpop.f32.mrf.mxu1 }
 0x2a1   :  { %v1339_v1 = vpop.f32.mrf.mxu1 }
 0x2a3   :  { %v2315_v36 = vpop.f32.mrf.mxu1 }
 0x2a4   :  { %v1503_v60 = vpack.c.bf16 %v2315_v36, %v2314_v63 }
 0x2a5   :  { %v1342_v30 = vpop.f32.mrf.mxu1 }
 0x2a6   :  { %v1502_v21 = vpack.c.bf16 %v1342_v30, %v1339_v1  ;;  %v2562_v1 = vld [vmem:[%s3520_s0] ss:$12 sps:$4 sm:$0xff]   ;;  %v2563_v30 = vld [vmem:[%s3520_s0 + $0x1c] ss:$12 sps:$4 sm:$0xff]  }
 0x2a7   :  { %v2318_v14 = vpop.f32.mrf.mxu1 }
 0x2a9   :  { %v1355_v11 = vpop.f32.mrf.mxu1 }
 0x2ab   :  { %v2319_v2 = vpop.f32.mrf.mxu1 }
 0x2ac   :  { %v1505_v55 = vpack.c.bf16 %v2319_v2, %v2318_v14  ;;  %v2564_v14 = vld [vmem:[%s3520_s0 + $0x18] ss:$12 sps:$4 sm:$0xff]   ;;  %v2565_v2 = vld [vmem:[%s3520_s0 + $0x34] ss:$12 sps:$4 sm:$0xff]  }
 0x2ad   :  { %v1358_v45 = vpop.f32.mrf.mxu1 }
 0x2ae   :  { %1523 = vmatpush1.bf16.msra.mxu1 %v1505_v55  ;;  %v1504_v40 = vpack.c.bf16 %v1358_v45, %v1355_v11  ;;  %v2566_v45 = vld [vmem:[%s3520_s0 + $0x30] ss:$12 sps:$4 sm:$0xff]  }
 0x2af   :  { %v3143_v15 = vpop.f32.mrf.mxu1  ;;  %1524 = vmatprep.subr.bf16.mxu1 %v2625_v0 }
 0x2b1   :  { %v3146_v35 = vpop.f32.mrf.mxu1 }
 0x2b2   :  { %1525 = vmatpush1.bf16.msra.mxu1 %v1504_v40  ;;  %v2567_v40 = vld [vmem:[%s3520_s0 + $0x4c] ss:$12 sps:$4 sm:$0xff]  }
 0x2b3   :  { %v3148_v31 = vpop.f32.mrf.mxu1  ;;  %1526 = vmatprep.subr.bf16.mxu1 %v2625_v0 }
 0x2b4   :  { %v1507_v3 = vpack.c.bf16 %v3148_v31, %v3143_v15  ;;  %v2568_v31 = vld [vmem:[%s3520_s0 + $0x48] ss:$12 sps:$4 sm:$0xff]  }
 0x2b5   :  { %v3151_v17 = vpop.f32.mrf.mxu1 }
 0x2b6   :  { %1527 = vmatpush1.bf16.msra.mxu1 %v1503_v60  ;;  %v1506_v53 = vpack.c.bf16 %v3151_v17, %v3146_v35  ;;  %v2569_v17 = vld [vmem:[%s3520_s0 + $0x64] ss:$12 sps:$4 sm:$0xff]  }
 0x2b7   :  { %v2326_v19 = vpop.f32.mrf.mxu1  ;;  %1528 = vmatprep.subr.bf16.mxu1 %v2625_v0 }
 0x2b9   :  { %v1387_v10 = vpop.f32.mrf.mxu1 }
 0x2ba   :  { %1529 = vmatpush1.bf16.msra.mxu1 %v1502_v21  ;;  %v2571_v21 = vld [vmem:[%s3520_s0 + $0x7c] ss:$12 sps:$4 sm:$0xff]  }
 0x2bb   :  { %v2327_v24 = vpop.f32.mrf.mxu1  ;;  %1530 = vmatprep.subr.bf16.mxu1 %v2625_v0 }
 0x2bc   :  { %v1509_v13 = vpack.c.bf16 %v2327_v24, %v2326_v19  ;;  %v2570_v19 = vld [vmem:[%s3520_s0 + $0x60] ss:$12 sps:$4 sm:$0xff]  }
 0x2bd   :  { %v1390_v42 = vpop.f32.mrf.mxu1  ;;  %v2573_v24 = vld [vmem:[%s3520_s0 + $0x94] ss:$12 sps:$4 sm:$0xff]  }
 0x2be   :  { %1531 = vmatpush1.bf16.msra.mxu1 %v1501_v34  ;;  %v1508_v37 = vpack.c.bf16 %v1390_v42, %v1387_v10  ;;  %v2572_v10 = vld [vmem:[%s3520_s0 + $0x78] ss:$12 sps:$4 sm:$0xff]   ;;  %v2580_v34 = vld [vmem:[%s3520_s0 + $0xe0] ss:$12 sps:$4 sm:$0xff]  }
 0x2bf   :  { %v2330_v22 = vpop.f32.mrf.mxu1  ;;  %1532 = vmatprep.subr.bf16.mxu1 %v2625_v0  ;;  %v2582_v42 = vld [vmem:[%s3520_s0 + $0xf8] ss:$12 sps:$4 sm:$0xff]  }
 0x2c1   :  { %v1403_v48 = vpop.f32.mrf.mxu1 }
 0x2c2   :  { %1533 = vmatpush1.bf16.msra.mxu1 %v1500_v41  ;;  %v2584_v41 = vld [vmem:[%s3520_s0 + $0xf4] ss:$12 sps:$4 sm:$0xff]  }
 0x2c3   :  { %v2331_v46 = vpop.f32.mrf.mxu1  ;;  %1534 = vmatprep.subr.bf16.mxu1 %v2625_v0 }
 0x2c4   :  { %v1511_v56 = vpack.c.bf16 %v2331_v46, %v2330_v22  ;;  %v2583_v22 = vld [vmem:[%s3520_s0 + $0xd8] ss:$12 sps:$4 sm:$0xff]   ;;  %v2586_v46 = vld [vmem:[%s3520_s0 + $0x128] ss:$12 sps:$4 sm:$0xff]  }
 0x2c5   :  { %v1406_v43 = vpop.f32.mrf.mxu1 }
 0x2c6   :  { %1535 = vmatpush1.bf16.msra.mxu1 %v1499_v47  ;;  %v1510_v52 = vpack.c.bf16 %v1406_v43, %v1403_v48  ;;  %v2585_v48 = vld [vmem:[%s3520_s0 + $0x110] ss:$12 sps:$4 sm:$0xff]   ;;  %v2588_v43 = vld [vmem:[%s3520_s0 + $0x10c] ss:$12 sps:$4 sm:$0xff]  }
 0x2c7   :  { %v2334_v49 = vpop.f32.mrf.mxu1  ;;  %1536 = vmatprep.subr.bf16.mxu1 %v2625_v0  ;;  %v2587_v47 = vld [vmem:[%s3520_s0 + $0xf0] ss:$12 sps:$4 sm:$0xff]  }
 0x2c9   :  { %v1419_v58 = vpop.f32.mrf.mxu1 }
 0x2ca   :  { %1537 = vmatpush1.bf16.msra.mxu1 %v1498_v51  ;;  %v2590_v51 = vld [vmem:[%s3520_s0 + $0x158] ss:$12 sps:$4 sm:$0xff]  }
 0x2cb   :  { %v2335_v61 = vpop.f32.mrf.mxu1  ;;  %1538 = vmatprep.subr.bf16.mxu1 %v2625_v0 }
 0x2cc   :  { %v1513_v16 = vpack.c.bf16 %v2335_v61, %v2334_v49  ;;  %v2589_v49 = vld [vmem:[%s3520_s0 + $0x140] ss:$12 sps:$4 sm:$0xff]   ;;  %v2592_v61 = vld [vmem:[%s3520_s0 + $0x124] ss:$12 sps:$4 sm:$0xff]  }
 0x2cd   :  { %v1422_v57 = vpop.f32.mrf.mxu1 }
 0x2ce   :  { %1539 = vmatpush2.bf16.msra.mxu1 %v1513_v16  ;;  %v1512_v4 = vpack.c.bf16 %v1422_v57, %v1419_v58  ;;  %v2591_v58 = vld [vmem:[%s3520_s0 + $0x108] ss:$12 sps:$4 sm:$0xff]   ;;  %v2593_v16 = vld [vmem:[%s3520_s0 + $0x170] ss:$12 sps:$4 sm:$0xff]  }
 0x2cf   :  { %v3159_v23 = vpop.f32.mrf.mxu1  ;;  %1540 = vmatprep.subr.bf16.mxu1 %v2625_v0  ;;  %v2594_v57 = vld [vmem:[%s3520_s0 + $0x188] ss:$12 sps:$4 sm:$0xff]  }
 0x2d1   :  { %v3162_v5 = vpop.f32.mrf.mxu1 }
 0x2d2   :  { %1541 = vmatpush2.bf16.msra.mxu1 %v1512_v4  ;;  %v2596_v4 = vld [vmem:[%s3520_s0 + $0x13c] ss:$12 sps:$4 sm:$0xff]  }
 0x2d3   :  { %v2339_v50 = vpop.f32.mrf.mxu1  ;;  %1542 = vmatprep.subr.bf16.mxu1 %v2625_v0 }
 0x2d4   :  { %v1515_v35 = vpack.c.bf16 %v2339_v50, %v3159_v23  ;;  %v2595_v23 = vld [vmem:[%s3520_s0 + $0x120] ss:$12 sps:$4 sm:$0xff]   ;;  %v2598_v50 = vld [vmem:[%s3520_s0 + $0x1b8] ss:$12 sps:$4 sm:$0xff]  }
 0x2d5   :  { %v3165_v54 = vpop.f32.mrf.mxu1 }
 0x2d6   :  { %1543 = vmatpush2.bf16.msra.mxu1 %v1511_v56  ;;  %v1514_v60 = vpack.c.bf16 %v3165_v54, %v3162_v5  ;;  %v2597_v5 = vld [vmem:[%s3520_s0 + $0x1a0] ss:$12 sps:$4 sm:$0xff]   ;;  %v2599_v56 = vld [vmem:[%s3520_s0 + $0x138] ss:$12 sps:$4 sm:$0xff]  }
 0x2d7   :  { %v2342_v8 = vpop.f32.mrf.mxu1  ;;  %1544 = vmatprep.subr.bf16.mxu1 %v2625_v0  ;;  %v2600_v54 = vld [vmem:[%s3520_s0 + $0x154] ss:$12 sps:$4 sm:$0xff]  }
 0x2d9   :  { %v1451_v9 = vpop.f32.mrf.mxu1 }
 0x2da   :  { %1545 = vmatpush2.bf16.msra.mxu1 %v1510_v52  ;;  %v2602_v52 = vld [vmem:[%s3520_s0 + $0x1e8] ss:$12 sps:$4 sm:$0xff]  }
 0x2db   :  { %v2343_v12 = vpop.f32.mrf.mxu1  ;;  %1546 = vmatprep.subr.bf16.mxu1 %v2625_v0 }
 0x2dc   :  { %v1517_v55 = vpack.c.bf16 %v2343_v12, %v2342_v8  ;;  %v2601_v8 = vld [vmem:[%s3520_s0 + $0x1d0] ss:$12 sps:$4 sm:$0xff]   ;;  %v2604_v12 = vld [vmem:[%s3520_s0 + $0x16c] ss:$12 sps:$4 sm:$0xff]  }
 0x2dd   :  { %v1454_v26 = vpop.f32.mrf.mxu1 }
 0x2de   :  { %1547 = vmatpush2.bf16.msra.mxu1 %v1509_v13  ;;  %v1516_v15 = vpack.c.bf16 %v1454_v26, %v1451_v9  ;;  %v2603_v9 = vld [vmem:[%s3520_s0 + $0x150] ss:$12 sps:$4 sm:$0xff]   ;;  %v2605_v13 = vld [vmem:[%s3520_s0 + $0x200] ss:$12 sps:$4 sm:$0xff]   ;;  %v2606_v26 = vld [vmem:[%s3520_s0 + $0x218] ss:$12 sps:$4 sm:$0xff]  }
 0x2df   :  { %v2346_v29 = vpop.f32.mrf.mxu1  ;;  %1548 = vmatprep.subr.bf16.mxu1 %v2625_v0 }
 0x2e1   :  { %v1467_v59 = vpop.f32.mrf.mxu1 }
 0x2e2   :  { %1549 = vmatpush2.bf16.msra.mxu1 %v1508_v37  ;;  %v2608_v37 = vld [vmem:[%s3520_s0 + $0x184] ss:$12 sps:$4 sm:$0xff]  }
 0x2e3   :  { %v2347_v62 = vpop.f32.mrf.mxu1  ;;  %1550 = vmatprep.subr.bf16.mxu1 %v2625_v0 }
 0x2e5   :  { %v1470_v7 = vpop.f32.mrf.mxu1 }
 0x2e6   :  { %1551 = vmatpush2.bf16.msra.mxu1 %v1507_v3  ;;  %v1518_v11 = vpack.c.bf16 %v1470_v7, %v1467_v59  ;;  %v2609_v59 = vld [vmem:[%s3520_s0 + $0x230] ss:$12 sps:$4 sm:$0xff]   ;;  %v2612_v7 = vld [vmem:[%s3520_s0 + $0x198] ss:$12 sps:$4 sm:$0xff]  }
 0x2e7   :  { %v2350_v25 = vpop.f32.mrf.mxu1  ;;  %1552 = vmatprep.subr.bf16.mxu1 %v2625_v0  ;;  %v1519_v0 = vpack.c.bf16 %v2347_v62, %v2346_v29  ;;  %v2607_v29 = vld [vmem:[%s3520_s0 + $0x168] ss:$12 sps:$4 sm:$0xff]   ;;  %v2610_v62 = vld [vmem:[%s3520_s0 + $0x180] ss:$12 sps:$4 sm:$0xff]  }
 0x2e8   :  { %v2611_v3 = vld [vmem:[%s3520_s0 + $0x19c] ss:$12 sps:$4 sm:$0xff]  }
 0x2e9   :  { %v1483_v6 = vpop.f32.mrf.mxu1 }
 0x2ea   :  { %1553 = vmatpush2.bf16.msra.mxu1 %v1506_v53  ;;  %v2614_v53 = vld [vmem:[%s3520_s0 + $0x1b0] ss:$12 sps:$4 sm:$0xff]  }
 0x2eb   :  { %v2351_v18 = vpop.f32.mrf.mxu1 }
 0x2ec   :  { %v1521_v20 = vpack.c.bf16 %v2351_v18, %v2350_v25  ;;  %v2613_v25 = vld [vmem:[%s3520_s0 + $0x1b4] ss:$12 sps:$4 sm:$0xff]  }
 0x2ed   :  { %v1486_v63 = vpop.f32.mrf.mxu1  ;;  %1555 = vmatmul.mubr.bf16.vlgmr.msra.gmra.mxu1 %v2562_v1  ;;  %v2616_v18 = vld [vmem:[%s3520_s0 + $0x1c8] ss:$12 sps:$4 sm:$0xff]  }
 0x2ee   :  { %v1520_v36 = vpack.c.bf16 %v1486_v63, %v1483_v6  ;;  %2352 = vmatprep.subr.bf16.mxu0 %v1521_v20  ;;  %1562 = vmatprep.mubr.bf16.mxu1 %v2563_v30  ;;  %v2615_v6 = vld [vmem:[%s3520_s0 + $0x1cc] ss:$12 sps:$4 sm:$0xff]   ;;  %v2619_v1 = vld [vmem:[%s3520_s0 + $0x1fc] ss:$12 sps:$4 sm:$0xff]   ;;  %v2621_v30 = vld [vmem:[%s3520_s0 + $0x214] ss:$12 sps:$4 sm:$0xff]  }
 0x2ef   :  { %2353 = vmatpush3.bf16.msra.mxu0 %v1521_v20  ;;  %v2617_v20 = vld [vmem:[%s3520_s0 + $0x1e4] ss:$12 sps:$4 sm:$0xff]   ;;  %v2618_v63 = vld [vmem:[%s3520_s0 + $0x1e0] ss:$12 sps:$4 sm:$0xff]  }
 0x2f0   :  { %2354 = vmatprep.subr.bf16.mxu0 %v1520_v36 }
 0x2f3   :  { %2355 = vmatpush3.bf16.msra.mxu0 %v1520_v36  ;;  %v2620_v36 = vld [vmem:[%s3520_s0 + $0x1f8] ss:$12 sps:$4 sm:$0xff]  }
 0x2f4   :  { %2356 = vmatprep.subr.bf16.mxu0 %v1519_v0 }
 0x2f5   :  { %1563 = vmatmul.mubr.bf16.gmra.mxu1 %v2564_v14  ;;  %v2623_v14 = vld [vmem:[%s3520_s0 + $0x22c] ss:$12 sps:$4 sm:$0xff]  }
 0x2f6   :  { %1570 = vmatprep.mubr.bf16.mxu1 %v2565_v2 }
 0x2f7   :  { %2357 = vmatpush3.bf16.msra.mxu0 %v1519_v0  ;;  %v2622_v0 = vld [vmem:[%s3520_s0 + $0x210] ss:$12 sps:$4 sm:$0xff]  }
 0x2f8   :  { %2358 = vmatprep.subr.bf16.mxu0 %v1518_v11 }
 0x2fb   :  { %2359 = vmatpush3.bf16.msra.mxu0 %v1518_v11  ;;  %v2624_v11 = vld [vmem:[%s3520_s0 + $0x228] ss:$12 sps:$4 sm:$0xff]  }
 0x2fc   :  { %2360 = vmatprep.subr.bf16.mxu0 %v1517_v55 }
 0x2fd   :  { %1571 = vmatmul.mubr.bf16.gmra.mxu1 %v2566_v45 }
 0x2fe   :  { %1578 = vmatprep.mubr.bf16.mxu1 %v2567_v40 }
 0x2ff   :  { %2361 = vmatpush3.bf16.msra.mxu0 %v1517_v55 }
 0x300   :  { %2362 = vmatprep.subr.bf16.mxu0 %v1516_v15 }
 0x303   :  { %2363 = vmatpush3.bf16.msra.mxu0 %v1516_v15 }
 0x304   :  { %2364 = vmatprep.subr.bf16.mxu0 %v1515_v35 }
 0x305   :  { %1579 = vmatmul.mubr.bf16.gmra.mxu1 %v2568_v31 }
 0x306   :  { %1586 = vmatprep.mubr.bf16.mxu1 %v2569_v17 }
 0x307   :  { %2365 = vmatpush3.bf16.msra.mxu0 %v1515_v35 }
 0x308   :  { %2366 = vmatprep.subr.bf16.mxu0 %v1514_v60 }
 0x30b   :  { %2367 = vmatpush3.bf16.msra.mxu0 %v1514_v60 }
 0x30d   :  { %1587 = vmatmul.mubr.bf16.gmra.mxu1 %v2570_v19 }
 0x30e   :  { %2369 = vmatmul.mubr.bf16.vlgmr.msra.gmra.mxu0 %v2980_v27  ;;  %1594 = vmatprep.mubr.bf16.mxu1 %v2571_v21  ;;  %v2574_v27 = vld [vmem:[%s3520_s0 + $0x90] ss:$12 sps:$4 sm:$0xff]  }
 0x30f   :  { %2372 = vmatprep.mubr.bf16.mxu0 %v2985_v28  ;;  %v2575_v28 = vld [vmem:[%s3520_s0 + $0xac] ss:$12 sps:$4 sm:$0xff]  }
 0x315   :  { %1595 = vmatmul.mubr.bf16.gmra.mxu1 %v2572_v10 }
 0x316   :  { %2373 = vmatmul.mubr.bf16.gmra.mxu0 %v2996_v32  ;;  %1602 = vmatprep.mubr.bf16.mxu1 %v2573_v24  ;;  %v2576_v32 = vld [vmem:[%s3520_s0 + $0xa8] ss:$12 sps:$4 sm:$0xff]  }
 0x317   :  { %2376 = vmatprep.mubr.bf16.mxu0 %v3001_v33  ;;  %v2577_v33 = vld [vmem:[%s3520_s0 + $0xc4] ss:$12 sps:$4 sm:$0xff]  }
 0x31d   :  { %1603 = vmatmul.mubr.bf16.gmra.mxu1 %v2574_v27 }
 0x31e   :  { %2377 = vmatmul.mubr.bf16.gmra.mxu0 %v3012_v38  ;;  %1610 = vmatprep.mubr.bf16.mxu1 %v2575_v28  ;;  %v2578_v38 = vld [vmem:[%s3520_s0 + $0xc8] ss:$12 sps:$4 sm:$0xff]  }
 0x31f   :  { %2380 = vmatprep.mubr.bf16.mxu0 %v3017_v39  ;;  %v2579_v39 = vld [vmem:[%s3520_s0 + $0xc0] ss:$12 sps:$4 sm:$0xff]  }
 0x325   :  { %1611 = vmatmul.mubr.bf16.gmra.mxu1 %v2576_v32 }
 0x326   :  { %2381 = vmatmul.mubr.bf16.gmra.mxu0 %v3028_v44  ;;  %1618 = vmatprep.mubr.bf16.mxu1 %v2577_v33  ;;  %v2581_v44 = vld [vmem:[%s3520_s0 + $0xdc] ss:$12 sps:$4 sm:$0xff]  }
 0x327   :  { %2384 = vmatprep.mubr.bf16.mxu0 %v2578_v38 }
 0x32d   :  { %1619 = vmatmul.mubr.bf16.gmra.mxu1 %v2579_v39 }
 0x32e   :  { %2385 = vmatmul.mubr.bf16.gmra.mxu0 %v2580_v34  ;;  %1626 = vmatprep.mubr.bf16.mxu1 %v2581_v44 }
 0x32f   :  { %2388 = vmatprep.mubr.bf16.mxu0 %v2582_v42 }
 0x335   :  { %1627 = vmatmul.mubr.bf16.gmra.mxu1 %v2583_v22 }
 0x336   :  { %1634 = vmatprep.mubr.bf16.mxu1 %v2584_v41  ;;  %2389 = vmatmul.mubr.bf16.gmra.mxu0 %v2585_v48 }
 0x337   :  { %2392 = vmatprep.mubr.bf16.mxu0 %v2586_v46 }
 0x33d   :  { %1635 = vmatmul.mubr.bf16.gmra.mxu1 %v2587_v47 }
 0x33e   :  { %1642 = vmatprep.mubr.bf16.mxu1 %v2588_v43  ;;  %2393 = vmatmul.mubr.bf16.gmra.mxu0 %v2589_v49 }
 0x33f   :  { %2396 = vmatprep.mubr.bf16.mxu0 %v2590_v51 }
 0x345   :  { %1643 = vmatmul.mubr.bf16.gmra.mxu1 %v2591_v58 }
 0x346   :  { %1650 = vmatprep.mubr.bf16.mxu1 %v2592_v61  ;;  %2397 = vmatmul.mubr.bf16.gmra.mxu0 %v2593_v16 }
 0x347   :  { %2400 = vmatprep.mubr.bf16.mxu0 %v2594_v57 }
 0x34d   :  { %1651 = vmatmul.mubr.bf16.gmra.mxu1 %v2595_v23 }
 0x34e   :  { %1658 = vmatprep.mubr.bf16.mxu1 %v2596_v4  ;;  %2401 = vmatmul.mubr.bf16.gmra.mxu0 %v2597_v5 }
 0x34f   :  { %2404 = vmatprep.mubr.bf16.mxu0 %v2598_v50 }
 0x355   :  { %1659 = vmatmul.mubr.bf16.gmra.mxu1 %v2599_v56 }
 0x356   :  { %1666 = vmatprep.mubr.bf16.mxu1 %v2600_v54  ;;  %2405 = vmatmul.mubr.bf16.gmra.mxu0 %v2601_v8 }
 0x357   :  { %2408 = vmatprep.mubr.bf16.mxu0 %v2602_v52 }
 0x35d   :  { %1667 = vmatmul.mubr.bf16.gmra.mxu1 %v2603_v9 }
 0x35e   :  { %1674 = vmatprep.mubr.bf16.mxu1 %v2604_v12  ;;  %2409 = vmatmul.mubr.bf16.gmra.mxu0 %v2605_v13 }
 0x35f   :  { %2412 = vmatprep.mubr.bf16.mxu0 %v2606_v26 }
 0x365   :  { %1675 = vmatmul.mubr.bf16.gmra.mxu1 %v2607_v29 }
 0x366   :  { %1682 = vmatprep.mubr.bf16.mxu1 %v2608_v37  ;;  %2413 = vmatmul.mubr.bf16.gmra.mxu0 %v2609_v59 }
 0x36d   :  { %1683 = vmatmul.mubr.bf16.gmra.mxu1 %v2610_v62 }
 0x36e   :  { %1690 = vmatprep.mubr.bf16.mxu1 %v2611_v3 }
 0x375   :  { %1691 = vmatmul.mubr.bf16.gmra.mxu1 %v2612_v7 }
 0x376   :  { %1698 = vmatprep.mubr.bf16.mxu1 %v2613_v25 }
 0x37d   :  { %1699 = vmatmul.mubr.bf16.gmra.mxu1 %v2614_v53 }
 0x37e   :  { %1706 = vmatprep.mubr.bf16.mxu1 %v2615_v6 }
 0x385   :  { %1707 = vmatmul.mubr.bf16.gmra.mxu1 %v2616_v18 }
 0x386   :  { %1714 = vmatprep.mubr.bf16.mxu1 %v2617_v20 }
 0x38d   :  { %1715 = vmatmul.mubr.bf16.gmra.mxu1 %v2618_v63 }
 0x38e   :  { %1722 = vmatprep.mubr.bf16.mxu1 %v2619_v1 }
 0x395   :  { %1723 = vmatmul.mubr.bf16.gmra.mxu1 %v2620_v36 }
 0x396   :  { %1730 = vmatprep.mubr.bf16.mxu1 %v2621_v30 }
 0x39d   :  { %1731 = vmatmul.mubr.bf16.gmra.mxu1 %v2622_v0 }
 0x39e   :  { %1738 = vmatprep.mubr.bf16.mxu1 %v2623_v14 }
 0x3a5   :  { %1739 = vmatmul.mubr.bf16.gmra.mxu1 %v2624_v11 }
 0x3ad   :  { %v1556_v2 = vpop.f32.mrf.mxu1 }
 0x3af   :  { %v1558_v55 = vpop.f32.mrf.mxu1 }
 0x3b1   :  { %v1559_v45 = vpop.f32.mrf.mxu1 }
 0x3b3   :  { %v1561_v15 = vpop.f32.mrf.mxu1 }
 0x3b5   :  { %v1564_v40 = vpop.f32.mrf.mxu1 }
 0x3b7   :  { %v1566_v35 = vpop.f32.mrf.mxu1 }
 0x3b9   :  { %v1567_v31 = vpop.f32.mrf.mxu1 }
 0x3bb   :  { %v1569_v60 = vpop.f32.mrf.mxu1 }
 0x3bd   :  { %v1572_v17 = vpop.f32.mrf.mxu1 }
 0x3bf   :  { %v1574_v19 = vpop.f32.mrf.mxu1 }
 0x3c1   :  { %v1575_v21 = vpop.f32.mrf.mxu1 }
 0x3c3   :  { %v1577_v10 = vpop.f32.mrf.mxu1 }
 0x3c5   :  { %v1580_v24 = vpop.f32.mrf.mxu1 }
 0x3c7   :  { %v1582_v27 = vpop.f32.mrf.mxu1 }
 0x3c9   :  { %v1583_v28 = vpop.f32.mrf.mxu1 }
 0x3cb   :  { %v1585_v32 = vpop.f32.mrf.mxu1 }
 0x3cd   :  { %v1588_v33 = vpop.f32.mrf.mxu1 }
 0x3ce   :  { %v2370_v38 = vpop.f32.mrf.mxu0 }
 0x3cf   :  { %v1790_v39 = vadd.f32 %v2370_v38, %v1564_v40  ;;  %v1590_v34 = vpop.f32.mrf.mxu1 }
 0x3d0   :  { %v1781_v44 = vpop.f32.mrf.mxu0 }
 0x3d1   :  { %1974 = vst [vmem:[%s3522_s3 + $0x10] sm:$0xff] %v1790_v39  ;;  %v1782_v42 = vadd.f32 %v1781_v44, %v1556_v2  ;;  %v1591_v22 = vpop.f32.mrf.mxu1 }
 0x3d2   :  { %v2371_v41 = vpop.f32.mrf.mxu0 }
 0x3d3   :  { %1972 = vst [vmem:[%s3522_s3] sm:$0xff] %v1782_v42  ;;  %v1793_v48 = vadd.f32 %v2371_v41, %v1567_v31  ;;  %v1593_v46 = vpop.f32.mrf.mxu1 }
 0x3d4   :  { %v1784_v47 = vpop.f32.mrf.mxu0 }
 0x3d5   :  { %1975 = vst [vmem:[%s3522_s3 + $0x18] sm:$0xff] %v1793_v48  ;;  %v1785_v43 = vadd.f32 %v1784_v47, %v1559_v45  ;;  %v1596_v49 = vpop.f32.mrf.mxu1 }
 0x3d6   :  { %v2374_v51 = vpop.f32.mrf.mxu0 }
 0x3d7   :  { %1973 = vst [vmem:[%s3522_s3 + $0x8] sm:$0xff] %v1785_v43  ;;  %v1806_v58 = vadd.f32 %v2374_v51, %v1580_v24  ;;  %v1598_v61 = vpop.f32.mrf.mxu1 }
 0x3d8   :  { %v1797_v16 = vpop.f32.mrf.mxu0 }
 0x3d9   :  { %v1798_v57 = vadd.f32 %v1797_v16, %v1572_v17  ;;  %1978 = vst [vmem:[%s3522_s3 + $0x30] sm:$0xff] %v1806_v58  ;;  %v1599_v23 = vpop.f32.mrf.mxu1 }
 0x3da   :  { %v2375_v4 = vpop.f32.mrf.mxu0 }
 0x3db   :  { %1976 = vst [vmem:[%s3522_s3 + $0x20] sm:$0xff] %v1798_v57  ;;  %v1809_v5 = vadd.f32 %v2375_v4, %v1583_v28  ;;  %v1601_v50 = vpop.f32.mrf.mxu1 }
 0x3dc   :  { %v1800_v56 = vpop.f32.mrf.mxu0 }
 0x3dd   :  { %v1801_v54 = vadd.f32 %v1800_v56, %v1575_v21  ;;  %1979 = vst [vmem:[%s3522_s3 + $0x38] sm:$0xff] %v1809_v5  ;;  %v1604_v8 = vpop.f32.mrf.mxu1 }
 0x3de   :  { %v2378_v52 = vpop.f32.mrf.mxu0 }
 0x3df   :  { %1977 = vst [vmem:[%s3522_s3 + $0x28] sm:$0xff] %v1801_v54  ;;  %v1822_v9 = vadd.f32 %v2378_v52, %v1596_v49  ;;  %v1606_v12 = vpop.f32.mrf.mxu1 }
 0x3e0   :  { %v1813_v13 = vpop.f32.mrf.mxu0 }
 0x3e1   :  { %v1814_v26 = vadd.f32 %v1813_v13, %v1588_v33  ;;  %1982 = vst [vmem:[%s3522_s3 + $0x50] sm:$0xff] %v1822_v9  ;;  %v1607_v29 = vpop.f32.mrf.mxu1 }
 0x3e2   :  { %v2379_v37 = vpop.f32.mrf.mxu0 }
 0x3e3   :  { %1980 = vst [vmem:[%s3522_s3 + $0x40] sm:$0xff] %v1814_v26  ;;  %v1825_v59 = vadd.f32 %v2379_v37, %v1599_v23  ;;  %v1609_v62 = vpop.f32.mrf.mxu1 }
 0x3e4   :  { %v1816_v3 = vpop.f32.mrf.mxu0 }
 0x3e5   :  { %v1817_v7 = vadd.f32 %v1816_v3, %v1591_v22  ;;  %1983 = vst [vmem:[%s3522_s3 + $0x58] sm:$0xff] %v1825_v59  ;;  %v1612_v25 = vpop.f32.mrf.mxu1 }
 0x3e6   :  { %v2382_v53 = vpop.f32.mrf.mxu0 }
 0x3e7   :  { %1981 = vst [vmem:[%s3522_s3 + $0x48] sm:$0xff] %v1817_v7  ;;  %v1838_v6 = vadd.f32 %v2382_v53, %v1612_v25  ;;  %v1614_v18 = vpop.f32.mrf.mxu1 }
 0x3e8   :  { %v1829_v20 = vpop.f32.mrf.mxu0 }
 0x3e9   :  { %v1830_v63 = vadd.f32 %v1829_v20, %v1604_v8  ;;  %1986 = vst [vmem:[%s3522_s3 + $0x70] sm:$0xff] %v1838_v6  ;;  %v1615_v1 = vpop.f32.mrf.mxu1 }
 0x3ea   :  { %v2383_v36 = vpop.f32.mrf.mxu0 }
 0x3eb   :  { %1984 = vst [vmem:[%s3522_s3 + $0x60] sm:$0xff] %v1830_v63  ;;  %v1841_v30 = vadd.f32 %v2383_v36, %v1615_v1  ;;  %v1617_v0 = vpop.f32.mrf.mxu1 }
 0x3ec   :  { %v1832_v14 = vpop.f32.mrf.mxu0 }
 0x3ed   :  { %v1833_v11 = vadd.f32 %v1832_v14, %v1607_v29  ;;  %1987 = vst [vmem:[%s3522_s3 + $0x78] sm:$0xff] %v1841_v30  ;;  %v1620_v2 = vpop.f32.mrf.mxu1 }
 0x3ee   :  { %v2386_v55 = vpop.f32.mrf.mxu0 }
 0x3ef   :  { %1985 = vst [vmem:[%s3522_s3 + $0x68] sm:$0xff] %v1833_v11  ;;  %v1622_v45 = vpop.f32.mrf.mxu1 }
 0x3f0   :  { %v1845_v15 = vpop.f32.mrf.mxu0 }
 0x3f1   :  { %v1846_v40 = vadd.f32 %v1845_v15, %v1620_v2  ;;  %v1623_v35 = vpop.f32.mrf.mxu1 }
 0x3f2   :  { %v2387_v31 = vpop.f32.mrf.mxu0 }
 0x3f3   :  { %1988 = vst [vmem:[%s3522_s3 + $0x80] sm:$0xff] %v1846_v40  ;;  %v1625_v60 = vpop.f32.mrf.mxu1 }
 0x3f4   :  { %v1848_v17 = vpop.f32.mrf.mxu0 }
 0x3f5   :  { %v1849_v19 = vadd.f32 %v1848_v17, %v1623_v35  ;;  %v1628_v21 = vpop.f32.mrf.mxu1 }
 0x3f6   :  { %v1854_v10 = vadd.f32 %v2386_v55, %v1628_v21  ;;  %v2390_v24 = vpop.f32.mrf.mxu0 }
 0x3f7   :  { %1989 = vst [vmem:[%s3522_s3 + $0x88] sm:$0xff] %v1849_v19  ;;  %v1630_v27 = vpop.f32.mrf.mxu1 }
 0x3f8   :  { %1990 = vst [vmem:[%s3522_s3 + $0x90] sm:$0xff] %v1854_v10  ;;  %v1861_v28 = vpop.f32.mrf.mxu0 }
 0x3f9   :  { %v1631_v32 = vpop.f32.mrf.mxu1 }
 0x3fa   :  { %v1857_v33 = vadd.f32 %v2387_v31, %v1631_v32  ;;  %v2391_v39 = vpop.f32.mrf.mxu0 }
 0x3fb   :  { %v1633_v38 = vpop.f32.mrf.mxu1 }
 0x3fc   :  { %1991 = vst [vmem:[%s3522_s3 + $0x98] sm:$0xff] %v1857_v33  ;;  %v1864_v22 = vpop.f32.mrf.mxu0 }
 0x3fd   :  { %v1636_v34 = vpop.f32.mrf.mxu1 }
 0x3fe   :  { %v1862_v44 = vadd.f32 %v1861_v28, %v1636_v34  ;;  %v2394_v47 = vpop.f32.mrf.mxu0 }
 0x3ff   :  { %v1638_v42 = vpop.f32.mrf.mxu1 }
 0x400   :  { %1992 = vst [vmem:[%s3522_s3 + $0xa0] sm:$0xff] %v1862_v44  ;;  %v1877_v58 = vpop.f32.mrf.mxu0 }
 0x401   :  { %v1639_v41 = vpop.f32.mrf.mxu1 }
 0x402   :  { %v1865_v48 = vadd.f32 %v1864_v22, %v1639_v41  ;;  %v2395_v23 = vpop.f32.mrf.mxu0 }
 0x403   :  { %v1641_v46 = vpop.f32.mrf.mxu1 }
 0x404   :  { %1993 = vst [vmem:[%s3522_s3 + $0xa8] sm:$0xff] %v1865_v48  ;;  %v1880_v56 = vpop.f32.mrf.mxu0 }
 0x405   :  { %v1644_v43 = vpop.f32.mrf.mxu1 }
 0x406   :  { %v1870_v49 = vadd.f32 %v2390_v24, %v1644_v43  ;;  %v2398_v9 = vpop.f32.mrf.mxu0 }
 0x407   :  { %v1646_v51 = vpop.f32.mrf.mxu1 }
 0x408   :  { %1994 = vst [vmem:[%s3522_s3 + $0xb0] sm:$0xff] %v1870_v49  ;;  %v1893_v29 = vpop.f32.mrf.mxu0 }
 0x409   :  { %v1647_v61 = vpop.f32.mrf.mxu1 }
 0x40a   :  { %v1873_v16 = vadd.f32 %v2391_v39, %v1647_v61  ;;  %v2399_v3 = vpop.f32.mrf.mxu0 }
 0x40b   :  { %v1649_v57 = vpop.f32.mrf.mxu1 }
 0x40c   :  { %1995 = vst [vmem:[%s3522_s3 + $0xb8] sm:$0xff] %v1873_v16  ;;  %v1896_v6 = vpop.f32.mrf.mxu0 }
 0x40d   :  { %v1652_v4 = vpop.f32.mrf.mxu1 }
 0x40e   :  { %v1878_v5 = vadd.f32 %v1877_v58, %v1652_v4  ;;  %v2402_v1 = vpop.f32.mrf.mxu0 }
 0x40f   :  { %v1654_v50 = vpop.f32.mrf.mxu1 }
 0x410   :  { %1996 = vst [vmem:[%s3522_s3 + $0xc0] sm:$0xff] %v1878_v5  ;;  %v1909_v14 = vpop.f32.mrf.mxu0 }
 0x411   :  { %v1655_v54 = vpop.f32.mrf.mxu1 }
 0x412   :  { %v1881_v8 = vadd.f32 %v1880_v56, %v1655_v54  ;;  %v2403_v45 = vpop.f32.mrf.mxu0 }
 0x413   :  { %v1657_v52 = vpop.f32.mrf.mxu1 }
 0x414   :  { %1997 = vst [vmem:[%s3522_s3 + $0xc8] sm:$0xff] %v1881_v8  ;;  %v1912_v31 = vpop.f32.mrf.mxu0 }
 0x415   :  { %v1660_v12 = vpop.f32.mrf.mxu1 }
 0x416   :  { %v1886_v13 = vadd.f32 %v2394_v47, %v1660_v12  ;;  %v2406_v21 = vpop.f32.mrf.mxu0 }
 0x417   :  { %v1662_v26 = vpop.f32.mrf.mxu1 }
 0x418   :  { %1998 = vst [vmem:[%s3522_s3 + $0xd0] sm:$0xff] %v1886_v13  ;;  %v1925_v28 = vpop.f32.mrf.mxu0 }
 0x419   :  { %v1663_v37 = vpop.f32.mrf.mxu1 }
 0x41a   :  { %v1889_v59 = vadd.f32 %v2395_v23, %v1663_v37  ;;  %v2407_v39 = vpop.f32.mrf.mxu0 }
 0x41b   :  { %v1665_v62 = vpop.f32.mrf.mxu1 }
 0x41c   :  { %1999 = vst [vmem:[%s3522_s3 + $0xd8] sm:$0xff] %v1889_v59  ;;  %v1928_v22 = vpop.f32.mrf.mxu0 }
 0x41d   :  { %v1668_v7 = vpop.f32.mrf.mxu1 }
 0x41e   :  { %v1894_v25 = vadd.f32 %v1893_v29, %v1668_v7  ;;  %v2410_v47 = vpop.f32.mrf.mxu0 }
 0x41f   :  { %v1670_v53 = vpop.f32.mrf.mxu1 }
 0x420   :  { %2000 = vst [vmem:[%s3522_s3 + $0xe0] sm:$0xff] %v1894_v25  ;;  %v1941_v58 = vpop.f32.mrf.mxu0 }
 0x421   :  { %v1671_v18 = vpop.f32.mrf.mxu1 }
 0x422   :  { %v1897_v20 = vadd.f32 %v1896_v6, %v1671_v18  ;;  %v2411_v23 = vpop.f32.mrf.mxu0 }
 0x423   :  { %v1673_v63 = vpop.f32.mrf.mxu1 }
 0x424   :  { %2001 = vst [vmem:[%s3522_s3 + $0xe8] sm:$0xff] %v1897_v20  ;;  %v1944_v56 = vpop.f32.mrf.mxu0 }
 0x425   :  { %v1676_v36 = vpop.f32.mrf.mxu1 }
 0x426   :  { %v1902_v30 = vadd.f32 %v2398_v9, %v1676_v36  ;;  %v2414_v9 = vpop.f32.mrf.mxu0 }
 0x427   :  { %v1678_v0 = vpop.f32.mrf.mxu1 }
 0x428   :  { %2002 = vst [vmem:[%s3522_s3 + $0xf0] sm:$0xff] %v1902_v30  ;;  %v1957_v29 = vpop.f32.mrf.mxu0 }
 0x429   :  { %v1679_v11 = vpop.f32.mrf.mxu1 }
 0x42a   :  { %v1905_v2 = vadd.f32 %v2399_v3, %v1679_v11  ;;  %v2415_v3 = vpop.f32.mrf.mxu0 }
 0x42b   :  { %v1681_v55 = vpop.f32.mrf.mxu1 }
 0x42c   :  { %2003 = vst [vmem:[%s3522_s3 + $0xf8] sm:$0xff] %v1905_v2  ;;  %v1960_v6 = vpop.f32.mrf.mxu0 }
 0x42d   :  { %v1684_v15 = vpop.f32.mrf.mxu1 }
 0x42e   :  { %v1910_v40 = vadd.f32 %v1909_v14, %v1684_v15 }
 0x42f   :  { %v1686_v35 = vpop.f32.mrf.mxu1 }
 0x430   :  { %2004 = vst [vmem:[%s3522_s3 + $0x100] sm:$0xff] %v1910_v40 }
 0x431   :  { %v1687_v60 = vpop.f32.mrf.mxu1 }
 0x432   :  { %v1913_v17 = vadd.f32 %v1912_v31, %v1687_v60 }
 0x433   :  { %v1689_v19 = vpop.f32.mrf.mxu1 }
 0x434   :  { %2005 = vst [vmem:[%s3522_s3 + $0x108] sm:$0xff] %v1913_v17 }
 0x435   :  { %v1692_v10 = vpop.f32.mrf.mxu1 }
 0x436   :  { %v1918_v24 = vadd.f32 %v2402_v1, %v1692_v10 }
 0x437   :  { %v1694_v27 = vpop.f32.mrf.mxu1 }
 0x438   :  { %2006 = vst [vmem:[%s3522_s3 + $0x110] sm:$0xff] %v1918_v24 }
 0x439   :  { %v1695_v32 = vpop.f32.mrf.mxu1 }
 0x43a   :  { %v1921_v33 = vadd.f32 %v2403_v45, %v1695_v32 }
 0x43b   :  { %v1697_v38 = vpop.f32.mrf.mxu1 }
 0x43c   :  { %2007 = vst [vmem:[%s3522_s3 + $0x118] sm:$0xff] %v1921_v33 }
 0x43d   :  { %v1700_v34 = vpop.f32.mrf.mxu1 }
 0x43e   :  { %v1926_v44 = vadd.f32 %v1925_v28, %v1700_v34 }
 0x43f   :  { %v1702_v42 = vpop.f32.mrf.mxu1 }
 0x440   :  { %2008 = vst [vmem:[%s3522_s3 + $0x120] sm:$0xff] %v1926_v44 }
 0x441   :  { %v1703_v41 = vpop.f32.mrf.mxu1 }
 0x442   :  { %v1929_v48 = vadd.f32 %v1928_v22, %v1703_v41 }
 0x443   :  { %v1705_v46 = vpop.f32.mrf.mxu1 }
 0x444   :  { %2009 = vst [vmem:[%s3522_s3 + $0x128] sm:$0xff] %v1929_v48 }
 0x445   :  { %v1708_v43 = vpop.f32.mrf.mxu1 }
 0x446   :  { %v1934_v49 = vadd.f32 %v2406_v21, %v1708_v43 }
 0x447   :  { %v1710_v51 = vpop.f32.mrf.mxu1 }
 0x448   :  { %2010 = vst [vmem:[%s3522_s3 + $0x130] sm:$0xff] %v1934_v49 }
 0x449   :  { %v1711_v61 = vpop.f32.mrf.mxu1 }
 0x44a   :  { %v1937_v16 = vadd.f32 %v2407_v39, %v1711_v61 }
 0x44b   :  { %v1713_v57 = vpop.f32.mrf.mxu1 }
 0x44c   :  { %2011 = vst [vmem:[%s3522_s3 + $0x138] sm:$0xff] %v1937_v16 }
 0x44d   :  { %v1716_v4 = vpop.f32.mrf.mxu1 }
 0x44e   :  { %v1942_v5 = vadd.f32 %v1941_v58, %v1716_v4 }
 0x44f   :  { %v1718_v50 = vpop.f32.mrf.mxu1 }
 0x450   :  { %2012 = vst [vmem:[%s3522_s3 + $0x140] sm:$0xff] %v1942_v5 }
 0x451   :  { %v1719_v54 = vpop.f32.mrf.mxu1 }
 0x452   :  { %v1945_v8 = vadd.f32 %v1944_v56, %v1719_v54 }
 0x453   :  { %v1721_v52 = vpop.f32.mrf.mxu1 }
 0x454   :  { %2013 = vst [vmem:[%s3522_s3 + $0x148] sm:$0xff] %v1945_v8 }
 0x455   :  { %v1724_v12 = vpop.f32.mrf.mxu1 }
 0x456   :  { %v1950_v13 = vadd.f32 %v2410_v47, %v1724_v12 }
 0x457   :  { %v1726_v26 = vpop.f32.mrf.mxu1 }
 0x458   :  { %2014 = vst [vmem:[%s3522_s3 + $0x150] sm:$0xff] %v1950_v13 }
 0x459   :  { %v1727_v37 = vpop.f32.mrf.mxu1 }
 0x45a   :  { %v1953_v59 = vadd.f32 %v2411_v23, %v1727_v37 }
 0x45b   :  { %v1729_v62 = vpop.f32.mrf.mxu1 }
 0x45c   :  { %2015 = vst [vmem:[%s3522_s3 + $0x158] sm:$0xff] %v1953_v59 }
 0x45d   :  { %v1732_v7 = vpop.f32.mrf.mxu1 }
 0x45e   :  { %v1958_v25 = vadd.f32 %v1957_v29, %v1732_v7 }
 0x45f   :  { %v1734_v53 = vpop.f32.mrf.mxu1 }
 0x460   :  { %2016 = vst [vmem:[%s3522_s3 + $0x160] sm:$0xff] %v1958_v25 }
 0x461   :  { %v1735_v18 = vpop.f32.mrf.mxu1 }
 0x462   :  { %v1961_v20 = vadd.f32 %v1960_v6, %v1735_v18 }
 0x463   :  { %v1737_v63 = vpop.f32.mrf.mxu1 }
 0x464   :  { %2017 = vst [vmem:[%s3522_s3 + $0x168] sm:$0xff] %v1961_v20 }
 0x465   :  { %v1740_v1 = vpop.f32.mrf.mxu1 }
 0x466   :  { %v1966_v36 = vadd.f32 %v2414_v9, %v1740_v1 }
 0x467   :  { %v1742_v30 = vpop.f32.mrf.mxu1 }
 0x468   :  { %2018 = vst [vmem:[%s3522_s3 + $0x170] sm:$0xff] %v1966_v36 }
 0x469   :  { %v1743_v0 = vpop.f32.mrf.mxu1 }
 0x46a   :  { %v1969_v14 = vadd.f32 %v2415_v3, %v1743_v0 }
 0x46b   :  { %v1745_v11 = vpop.f32.mrf.mxu1 }
 0x46c   :  { %2019 = vst [vmem:[%s3522_s3 + $0x178] sm:$0xff] %v1969_v14 }

</bundles_post_ra>
